<compile_context>
chip_gen: v7x
topology: tpu7x:2x2x1
jax: 0.10.0
libtpu: 0.0.40
codegen_flags: <defaults>
</compile_context>

<pallas_src>
import functools

import jax
import jax.numpy as jnp
from jax.experimental import pallas as pl
from jax.experimental.pallas import tpu as pltpu


def _cross_attn_kernel(num_heads,
                       q_ref, k_ref, v_ref, maskb_ref,
                       wqT_ref, wkT_ref, wvT_ref, woT_ref,
                       bq_ref, bk_ref, bv_ref, bo_ref,
                       gamma_ref, beta_ref,
                       o_ref,
                       qp_scr, m_scr, l_scr, acc_scr):
    """Grid = (batch, q_tile, kv_tile). kv_tile is the last ('arbitrary') reduction axis."""
    kv = pl.program_id(2)
    n_kv = pl.num_programs(2)

    H = num_heads
    Tq, E = qp_scr.shape
    Dh = E // H
    cdt = q_ref.dtype  # MXU operand dtype (f32 or bf16); accumulation is f32.

    # ---- init (first KV tile of each (batch, q_tile)) ------------------------
    @pl.when(kv == 0)
    def _init():
        # Q projection; 1/sqrt(Dh) is pre-folded into wqT / bq by the wrapper.
        qp = jnp.dot(q_ref[0], wqT_ref[...],
                     preferred_element_type=jnp.float32) + bq_ref[...]
        qp_scr[...] = qp.astype(cdt)
        m_scr[...] = jnp.full_like(m_scr, -jnp.inf)
        l_scr[...] = jnp.zeros_like(l_scr)
        acc_scr[...] = jnp.zeros_like(acc_scr)

    # ---- per-KV-tile work ----------------------------------------------------
    # K / V projections for this tile only (streamed; f32 accumulation).
    kp = (jnp.dot(k_ref[0], wkT_ref[...],
                  preferred_element_type=jnp.float32) + bk_ref[...]).astype(cdt)
    vp = (jnp.dot(v_ref[0], wvT_ref[...],
                  preferred_element_type=jnp.float32) + bv_ref[...]).astype(cdt)
    maskb = maskb_ref[0]                      # (1, Tk) additive key-padding bias, f32

    for h in range(H):                        # statically unrolled, H small
        sl = slice(h * Dh, (h + 1) * Dh)
        qh = qp_scr[:, sl]                    # (Tq, Dh)  static ref-slice, no full reload
        kh = kp[:, sl]                        # (Tk, Dh)
        vh = vp[:, sl]                        # (Tk, Dh)
        # scores without materializing kh.T (contract last dims directly on the MXU)
        s = jax.lax.dot_general(qh, kh, (((1,), (1,)), ((), ())),
                                preferred_element_type=jnp.float32) + maskb
        m_prev = m_scr[h]                                     # (Tq, 1)
        m_new = jnp.maximum(m_prev, jnp.max(s, axis=-1, keepdims=True))
        alpha = jnp.exp(m_prev - m_new)
        p = jnp.exp(s - m_new)                                # (Tq, Tk) f32
        l_scr[h] = alpha * l_scr[h] + jnp.sum(p, axis=-1, keepdims=True)
        acc_scr[h] = alpha * acc_scr[h] + jnp.dot(
            p.astype(cdt), vh, preferred_element_type=jnp.float32)
        m_scr[h] = m_new

    # ---- finalize (last KV tile): out-proj + residual + LayerNorm -----------
    @pl.when(kv == n_kv - 1)
    def _finalize():
        out = jnp.zeros((Tq, E), jnp.float32)
        for h in range(H):
            norm_h = acc_scr[h] / l_scr[h]    # (Tq, Dh) f32
            # accumulate this head's contribution through its slice of W_out^T
            out = out + jnp.dot(norm_h.astype(cdt), woT_ref[h * Dh:(h + 1) * Dh, :],
                                preferred_element_type=jnp.float32)
        out = out + bo_ref[...]
        res = q_ref[0].astype(jnp.float32) + out     # residual (dropout==identity, eval)

        # LayerNorm over embedding dim (eps = 1e-5, PyTorch default), f32 math
        mu = jnp.mean(res, axis=-1, keepdims=True)
        var = jnp.mean(jnp.square(res - mu), axis=-1, keepdims=True)
        y = (res - mu) * jax.lax.rsqrt(var + 1e-5)
        y = y * gamma_ref[...] + beta_ref[...]
        o_ref[0] = y.astype(o_ref.dtype)


def _pick_kv_tile(Lk, pref):
    # Tk must be a multiple of 128 (key-padding-bias block keeps a lane-aligned last dim
    # and the K/V sublane dim stays 8-aligned) and divide Lk; otherwise take the whole Lk.
    if Lk % 128 == 0:
        t = max(128, (min(pref, Lk) // 128) * 128)
        while t >= 128:
            if Lk % t == 0:
                return t
            t -= 128
    return Lk


def _pick_q_tile(Lq, pref):
    # Tq must be a multiple of 8 dividing Lq, otherwise take the whole Lq.
    if Lq % 8 == 0 and Lq > pref:
        t = max(8, (min(pref, Lq) // 8) * 8)
        while t >= 8:
            if Lq % t == 0:
                return t
            t -= 8
    return Lq


def cross_attention(query, key, value, params, num_heads,
                    key_padding_mask=None, kv_tile=512, q_tile=256):
    B, Lq, E = query.shape
    Lk = key.shape[1]
    assert E % num_heads == 0, "embed_dim must be divisible by num_heads"
    Dh = E // num_heads
    scale = 1.0 / (Dh ** 0.5)
    dtype = query.dtype

    Tk = _pick_kv_tile(Lk, kv_tile)
    n_kv = Lk // Tk
    Tq = _pick_q_tile(Lq, q_tile)
    n_q = Lq // Tq

    # key_padding_mask: bool (B, Lk), True == ignore that key  -> additive bias
    if key_padding_mask is None:
        mask_bias = jnp.zeros((B, 1, Lk), jnp.float32)
    else:
        mask_bias = jnp.where(key_padding_mask, -1e9, 0.0).astype(jnp.float32)[:, None, :]

    w_in = params["in_proj_weight"].astype(jnp.float32)
    b_in = params["in_proj_bias"].astype(jnp.float32)
    # Pre-transposed weights (no in-kernel transposes). Fold 1/sqrt(Dh) into Q path.
    wqT = (w_in[:E].T * scale).astype(dtype)
    wkT = w_in[E:2 * E].T.astype(dtype)
    wvT = w_in[2 * E:].T.astype(dtype)
    woT = params["out_proj_weight"].T.astype(dtype)
    bq = (b_in[:E] * scale).reshape(1, E)
    bk = b_in[E:2 * E].reshape(1, E)
    bv = b_in[2 * E:].reshape(1, E)
    bo = params["out_proj_bias"].astype(jnp.float32).reshape(1, E)
    gamma = params["ln_weight"].astype(jnp.float32).reshape(1, E)
    beta = params["ln_bias"].astype(jnp.float32).reshape(1, E)

    kernel = functools.partial(_cross_attn_kernel, num_heads)
    mat_spec = lambda: pl.BlockSpec((E, E), lambda b, q, kv: (0, 0))
    vec_spec = lambda: pl.BlockSpec((1, E), lambda b, q, kv: (0, 0))

    return pl.pallas_call(
        kernel,
        out_shape=jax.ShapeDtypeStruct((B, Lq, E), dtype),
        grid_spec=pltpu.PrefetchScalarGridSpec(
            num_scalar_prefetch=0,
            grid=(B, n_q, n_kv),                 # reduction (kv) axis last
            in_specs=[
                pl.BlockSpec((1, Tq, E), lambda b, q, kv: (b, q, 0)),   # query tile
                pl.BlockSpec((1, Tk, E), lambda b, q, kv: (b, kv, 0)),  # key tile
                pl.BlockSpec((1, Tk, E), lambda b, q, kv: (b, kv, 0)),  # value tile
                pl.BlockSpec((1, 1, Tk), lambda b, q, kv: (b, 0, kv)),  # key-padding bias
                mat_spec(), mat_spec(), mat_spec(), mat_spec(),         # WqT WkT WvT WoT
                vec_spec(), vec_spec(), vec_spec(), vec_spec(),         # bq bk bv bo
                vec_spec(), vec_spec(),                                 # ln gamma, beta
            ],
            out_specs=pl.BlockSpec((1, Tq, E), lambda b, q, kv: (b, q, 0)),
            scratch_shapes=[
                pltpu.VMEM((Tq, E), dtype),                      # projected Q
                pltpu.VMEM((num_heads, Tq, 1), jnp.float32),     # running max m
                pltpu.VMEM((num_heads, Tq, 1), jnp.float32),     # running sum l
                pltpu.VMEM((num_heads, Tq, Dh), jnp.float32),    # running acc
            ]),
        compiler_params=pltpu.CompilerParams(
            dimension_semantics=("parallel", "parallel", "arbitrary"),
            vmem_limit_bytes=64 * 1024 * 1024),
    )(query, key, value, mask_bias,
      wqT, wkT, wvT, woT,
      bq, bk, bv, bo,
      gamma, beta)


def _reference(query, key, value, params, num_heads, key_padding_mask=None):
    """Pure-JAX mirror of PyTorch nn.MultiheadAttention + residual LayerNorm (eval)."""
    E = query.shape[-1]
    w, b = params["in_proj_weight"], params["in_proj_bias"]
    wq, wk, wv = w[:E], w[E:2 * E], w[2 * E:]
    bq, bk, bv = b[:E], b[E:2 * E], b[2 * E:]
    q = query @ wq.T + bq
    k = key @ wk.T + bk
    v = value @ wv.T + bv
    B, Lq, _ = q.shape
    Lk = k.shape[1]
    H, Dh = num_heads, E // num_heads
    qh = q.reshape(B, Lq, H, Dh).transpose(0, 2, 1, 3)
    kh = k.reshape(B, Lk, H, Dh).transpose(0, 2, 1, 3)
    vh = v.reshape(B, Lk, H, Dh).transpose(0, 2, 1, 3)
    s = jnp.einsum("bhqd,bhkd->bhqk", qh, kh) / (Dh ** 0.5)
    if key_padding_mask is not None:
        s = s + jnp.where(key_padding_mask, -1e9, 0.0)[:, None, None, :]
    p = jax.nn.softmax(s, axis=-1)
    o = jnp.einsum("bhqk,bhkd->bhqd", p, vh).transpose(0, 2, 1, 3).reshape(B, Lq, E)
    o = o @ params["out_proj_weight"].T + params["out_proj_bias"]
    res = query + o
    mu = res.mean(-1, keepdims=True)
    var = ((res - mu) ** 2).mean(-1, keepdims=True)
    y = (res - mu) / jnp.sqrt(var + 1e-5)
    return y * params["ln_weight"] + params["ln_bias"]


if __name__ == "__main__":
    B, Lq, Lk, E, H = 2, 8, 8, 32, 4

    key_root = jax.random.PRNGKey(0)
    ks = jax.random.split(key_root, 12)

    query = jax.random.normal(ks[0], (B, Lq, E), jnp.float32)
    key_ = jax.random.normal(ks[1], (B, Lk, E), jnp.float32)
    value = jax.random.normal(ks[2], (B, Lk, E), jnp.float32)

    params = {
        "in_proj_weight": 0.05 * jax.random.normal(ks[3], (3 * E, E), jnp.float32),
        "in_proj_bias": 0.01 * jax.random.normal(ks[4], (3 * E,), jnp.float32),
        "out_proj_weight": 0.05 * jax.random.normal(ks[5], (E, E), jnp.float32),
        "out_proj_bias": 0.01 * jax.random.normal(ks[6], (E,), jnp.float32),
        "ln_weight": jnp.ones((E,), jnp.float32),
        "ln_bias": jnp.zeros((E,), jnp.float32),
    }

    # --- test 1: single KV tile, key_padding_mask on the last two keys of batch 1 ---
    key_padding_mask = jnp.zeros((B, Lk), bool).at[1, Lk - 2:].set(True)
    out = cross_attention(query, key_, value, params, H, key_padding_mask)
    out = jax.block_until_ready(out)
    ref = _reference(query, key_, value, params, H, key_padding_mask)
    assert out.shape == (B, Lq, E)
    assert jnp.allclose(out, ref, rtol=1e-4, atol=1e-4), "mismatch vs reference (test 1)"

    # --- test 2: streamed KV (Lk=256, Tk=128 -> 2 kv tiles, online softmax),
    #             mask spans a tile boundary and fully masks one tile of batch 1 ---
    Lk2 = 256
    key2 = jax.random.normal(ks[7], (B, Lk2, E), jnp.float32)
    value2 = jax.random.normal(ks[8], (B, Lk2, E), jnp.float32)
    kpm2 = jnp.zeros((B, Lk2), bool).at[1, 100:].set(True)
    out2 = cross_attention(query, key2, value2, params, H, kpm2, kv_tile=128)
    out2 = jax.block_until_ready(out2)
    ref2 = _reference(query, key2, value2, params, H, kpm2)
    assert out2.shape == (B, Lq, E)
    assert jnp.allclose(out2, ref2, rtol=1e-4, atol=1e-4), "mismatch vs reference (test 2)"

    # --- test 3: query tiling (Lq=16, Tq=8 -> 2 parallel q tiles) + streamed KV ---
    Lq3 = 16
    query3 = jax.random.normal(ks[9], (B, Lq3, E), jnp.float32)
    out3 = cross_attention(query3, key2, value2, params, H, kpm2,
                           kv_tile=128, q_tile=8)
    out3 = jax.block_until_ready(out3)
    ref3 = _reference(query3, key2, value2, params, H, kpm2)
    assert out3.shape == (B, Lq3, E)
    assert jnp.allclose(out3, ref3, rtol=1e-4, atol=1e-4), "mismatch vs reference (test 3)"

    print("KERNEL_OK")
</pallas_src>

<mosaic_0001>
module attributes {stable_mosaic.version = 11 : i64} {
  func.func @_cross_attn_kernel(%arg0: i32, %arg1: i32, %arg2: i32, %arg3: memref<1x8x32xf32, #tpu.memory_space<vmem>>, %arg4: memref<1x8x32xf32, #tpu.memory_space<vmem>>, %arg5: memref<1x8x32xf32, #tpu.memory_space<vmem>>, %arg6: memref<1x1x8xf32, #tpu.memory_space<vmem>>, %arg7: memref<32x32xf32, #tpu.memory_space<vmem>>, %arg8: memref<32x32xf32, #tpu.memory_space<vmem>>, %arg9: memref<32x32xf32, #tpu.memory_space<vmem>>, %arg10: memref<32x32xf32, #tpu.memory_space<vmem>>, %arg11: memref<1x32xf32, #tpu.memory_space<vmem>>, %arg12: memref<1x32xf32, #tpu.memory_space<vmem>>, %arg13: memref<1x32xf32, #tpu.memory_space<vmem>>, %arg14: memref<1x32xf32, #tpu.memory_space<vmem>>, %arg15: memref<1x32xf32, #tpu.memory_space<vmem>>, %arg16: memref<1x32xf32, #tpu.memory_space<vmem>>, %arg17: memref<1x8x32xf32, #tpu.memory_space<vmem>>, %arg18: memref<8x32xf32, #tpu.memory_space<vmem>>, %arg19: memref<4x8x1xf32, #tpu.memory_space<vmem>>, %arg20: memref<4x8x1xf32, #tpu.memory_space<vmem>>, %arg21: memref<4x8x8xf32, #tpu.memory_space<vmem>>) attributes {dimension_semantics = [#tpu.dimension_semantics<parallel>, #tpu.dimension_semantics<parallel>, #tpu.dimension_semantics<arbitrary>], iteration_bounds = array<i64: 2, 1, 1>, scalar_prefetch = 0 : i64, scratch_operands = 4 : i64, tpu.core_type = #tpu.core_type<tc>, window_params = [{transform_indices = @transform_0, window_bounds = array<i64: 1, 8, 32>}, {transform_indices = @transform_1, window_bounds = array<i64: 1, 8, 32>}, {transform_indices = @transform_2, window_bounds = array<i64: 1, 8, 32>}, {transform_indices = @transform_3, window_bounds = array<i64: 1, 1, 8>}, {pipeline_mode = #tpu.pipeline_mode<synchronous>, transform_indices = @transform_4, window_bounds = array<i64: 32, 32>}, {pipeline_mode = #tpu.pipeline_mode<synchronous>, transform_indices = @transform_5, window_bounds = array<i64: 32, 32>}, {pipeline_mode = #tpu.pipeline_mode<synchronous>, transform_indices = @transform_6, window_bounds = array<i64: 32, 32>}, {pipeline_mode = #tpu.pipeline_mode<synchronous>, transform_indices = @transform_7, window_bounds = array<i64: 32, 32>}, {pipeline_mode = #tpu.pipeline_mode<synchronous>, transform_indices = @transform_8, window_bounds = array<i64: 1, 32>}, {pipeline_mode = #tpu.pipeline_mode<synchronous>, transform_indices = @transform_9, window_bounds = array<i64: 1, 32>}, {pipeline_mode = #tpu.pipeline_mode<synchronous>, transform_indices = @transform_10, window_bounds = array<i64: 1, 32>}, {pipeline_mode = #tpu.pipeline_mode<synchronous>, transform_indices = @transform_11, window_bounds = array<i64: 1, 32>}, {pipeline_mode = #tpu.pipeline_mode<synchronous>, transform_indices = @transform_12, window_bounds = array<i64: 1, 32>}, {pipeline_mode = #tpu.pipeline_mode<synchronous>, transform_indices = @transform_13, window_bounds = array<i64: 1, 32>}, {transform_indices = @transform_14, window_bounds = array<i64: 1, 8, 32>}]} {
    %c0_i32 = arith.constant 0 : i32
    %0 = arith.cmpi eq, %arg2, %c0_i32 : i32
    %1 = arith.extui %0 : i1 to i32
    %c0_i32_0 = arith.constant 0 : i32
    %2 = arith.cmpi ne, %1, %c0_i32_0 : i32
    scf.if %2 {
      %c0_110 = arith.constant 0 : index
      %c0_111 = arith.constant 0 : index
      %c0_112 = arith.constant 0 : index
      %170 = vector.load %arg3[%c0_110, %c0_111, %c0_112] : memref<1x8x32xf32, #tpu.memory_space<vmem>>, vector<1x8x32xf32>
      %171 = vector.shape_cast %170 : vector<1x8x32xf32> to vector<8x32xf32>
      %c0_113 = arith.constant 0 : index
      %c0_114 = arith.constant 0 : index
      %172 = vector.load %arg7[%c0_113, %c0_114] : memref<32x32xf32, #tpu.memory_space<vmem>>, vector<32x32xf32>
      %cst_115 = arith.constant dense<0.000000e+00> : vector<8x32xf32>
      %173 = tpu.matmul %171, %172, %cst_115 {dimension_numbers = #tpu.dot_dimension_numbers<[1], [0], [0], [1], [0, 0, 1, 1], [], []>} : vector<8x32xf32>, vector<32x32xf32>, vector<8x32xf32> -> vector<8x32xf32>
      %c0_116 = arith.constant 0 : index
      %c0_117 = arith.constant 0 : index
      %174 = vector.load %arg11[%c0_116, %c0_117] : memref<1x32xf32, #tpu.memory_space<vmem>>, vector<1x32xf32>
      %175 = vector.broadcast %174 : vector<1x32xf32> to vector<8x32xf32>
      %176 = arith.addf %173, %175 : vector<8x32xf32>
      %c0_118 = arith.constant 0 : index
      %c0_119 = arith.constant 0 : index
      %177 = vector.load %arg18[%c0_118, %c0_119] : memref<8x32xf32, #tpu.memory_space<vmem>>, vector<8x32xf32>
      tpu.vector_store %arg18[%c0_118, %c0_119], %176 {strides = array<i32>} : memref<8x32xf32, #tpu.memory_space<vmem>>, vector<8x32xf32>,
      %cst_120 = arith.constant 0xFF800000 : f32
      %178 = vector.broadcast %cst_120 : f32 to vector<4x8x1xf32>
      %c0_121 = arith.constant 0 : index
      %c0_122 = arith.constant 0 : index
      %c0_123 = arith.constant 0 : index
      %179 = vector.load %arg19[%c0_121, %c0_122, %c0_123] : memref<4x8x1xf32, #tpu.memory_space<vmem>>, vector<4x8x1xf32>
      tpu.vector_store %arg19[%c0_121, %c0_122, %c0_123], %178 {strides = array<i32>} : memref<4x8x1xf32, #tpu.memory_space<vmem>>, vector<4x8x1xf32>,
      %cst_124 = arith.constant 0.000000e+00 : f32
      %180 = vector.broadcast %cst_124 : f32 to vector<4x8x1xf32>
      %c0_125 = arith.constant 0 : index
      %c0_126 = arith.constant 0 : index
      %c0_127 = arith.constant 0 : index
      %181 = vector.load %arg20[%c0_125, %c0_126, %c0_127] : memref<4x8x1xf32, #tpu.memory_space<vmem>>, vector<4x8x1xf32>
      tpu.vector_store %arg20[%c0_125, %c0_126, %c0_127], %180 {strides = array<i32>} : memref<4x8x1xf32, #tpu.memory_space<vmem>>, vector<4x8x1xf32>,
      %cst_128 = arith.constant 0.000000e+00 : f32
      %182 = vector.broadcast %cst_128 : f32 to vector<4x8x8xf32>
      %c0_129 = arith.constant 0 : index
      %c0_130 = arith.constant 0 : index
      %c0_131 = arith.constant 0 : index
      %183 = vector.load %arg21[%c0_129, %c0_130, %c0_131] : memref<4x8x8xf32, #tpu.memory_space<vmem>>, vector<4x8x8xf32>
      tpu.vector_store %arg21[%c0_129, %c0_130, %c0_131], %182 {strides = array<i32>} : memref<4x8x8xf32, #tpu.memory_space<vmem>>, vector<4x8x8xf32>,
    } else {
    }
    %c0 = arith.constant 0 : index
    %c0_1 = arith.constant 0 : index
    %c0_2 = arith.constant 0 : index
    %3 = vector.load %arg4[%c0, %c0_1, %c0_2] : memref<1x8x32xf32, #tpu.memory_space<vmem>>, vector<1x8x32xf32>
    %4 = vector.shape_cast %3 : vector<1x8x32xf32> to vector<8x32xf32>
    %c0_3 = arith.constant 0 : index
    %c0_4 = arith.constant 0 : index
    %5 = vector.load %arg8[%c0_3, %c0_4] : memref<32x32xf32, #tpu.memory_space<vmem>>, vector<32x32xf32>
    %cst = arith.constant dense<0.000000e+00> : vector<8x32xf32>
    %6 = tpu.matmul %4, %5, %cst {dimension_numbers = #tpu.dot_dimension_numbers<[1], [0], [0], [1], [0, 0, 1, 1], [], []>} : vector<8x32xf32>, vector<32x32xf32>, vector<8x32xf32> -> vector<8x32xf32>
    %c0_5 = arith.constant 0 : index
    %c0_6 = arith.constant 0 : index
    %7 = vector.load %arg12[%c0_5, %c0_6] : memref<1x32xf32, #tpu.memory_space<vmem>>, vector<1x32xf32>
    %8 = vector.broadcast %7 : vector<1x32xf32> to vector<8x32xf32>
    %9 = arith.addf %6, %8 : vector<8x32xf32>
    %c0_7 = arith.constant 0 : index
    %c0_8 = arith.constant 0 : index
    %c0_9 = arith.constant 0 : index
    %10 = vector.load %arg5[%c0_7, %c0_8, %c0_9] : memref<1x8x32xf32, #tpu.memory_space<vmem>>, vector<1x8x32xf32>
    %11 = vector.shape_cast %10 : vector<1x8x32xf32> to vector<8x32xf32>
    %c0_10 = arith.constant 0 : index
    %c0_11 = arith.constant 0 : index
    %12 = vector.load %arg9[%c0_10, %c0_11] : memref<32x32xf32, #tpu.memory_space<vmem>>, vector<32x32xf32>
    %cst_12 = arith.constant dense<0.000000e+00> : vector<8x32xf32>
    %13 = tpu.matmul %11, %12, %cst_12 {dimension_numbers = #tpu.dot_dimension_numbers<[1], [0], [0], [1], [0, 0, 1, 1], [], []>} : vector<8x32xf32>, vector<32x32xf32>, vector<8x32xf32> -> vector<8x32xf32>
    %c0_13 = arith.constant 0 : index
    %c0_14 = arith.constant 0 : index
    %14 = vector.load %arg13[%c0_13, %c0_14] : memref<1x32xf32, #tpu.memory_space<vmem>>, vector<1x32xf32>
    %15 = vector.broadcast %14 : vector<1x32xf32> to vector<8x32xf32>
    %16 = arith.addf %13, %15 : vector<8x32xf32>
    %c0_15 = arith.constant 0 : index
    %c0_16 = arith.constant 0 : index
    %c0_17 = arith.constant 0 : index
    %17 = vector.load %arg6[%c0_15, %c0_16, %c0_17] : memref<1x1x8xf32, #tpu.memory_space<vmem>>, vector<1x1x8xf32>
    %18 = vector.shape_cast %17 : vector<1x1x8xf32> to vector<1x8xf32>
    %c0_18 = arith.constant 0 : index
    %c0_19 = arith.constant 0 : index
    %19 = vector.load %arg18[%c0_18, %c0_19] : memref<8x32xf32, #tpu.memory_space<vmem>>, vector<8x8xf32>
    %20 = vector.extract_strided_slice %9 {offsets = [0, 0], sizes = [8, 8], strides = [1, 1]} : vector<8x32xf32> to vector<8x8xf32>
    %21 = vector.extract_strided_slice %16 {offsets = [0, 0], sizes = [8, 8], strides = [1, 1]} : vector<8x32xf32> to vector<8x8xf32>
    %cst_20 = arith.constant dense<0.000000e+00> : vector<8x8xf32>
    %22 = tpu.matmul %19, %20, %cst_20 {dimension_numbers = #tpu.dot_dimension_numbers<[1], [1], [0], [0], [0, 0, 1, 0], [], []>} : vector<8x8xf32>, vector<8x8xf32>, vector<8x8xf32> -> vector<8x8xf32>
    %23 = vector.broadcast %18 : vector<1x8xf32> to vector<8x8xf32>
    %24 = arith.addf %22, %23 : vector<8x8xf32>
    %c0_21 = arith.constant 0 : index
    %c0_22 = arith.constant 0 : index
    %c0_23 = arith.constant 0 : index
    %25 = vector.load %arg19[%c0_21, %c0_22, %c0_23] : memref<4x8x1xf32, #tpu.memory_space<vmem>>, vector<1x8x1xf32>
    %26 = vector.shape_cast %25 : vector<1x8x1xf32> to vector<8x1xf32>
    %cst_24 = arith.constant dense<0xFF800000> : vector<8xf32>
    %27 = vector.multi_reduction <maximumf>, %24, %cst_24 [1] : vector<8x8xf32> to vector<8xf32>
    %28 = vector.shape_cast %27 : vector<8xf32> to vector<8x1xf32>
    %29 = arith.maximumf %26, %28 : vector<8x1xf32>
    %30 = arith.subf %26, %29 : vector<8x1xf32>
    %31 = math.exp %30 : vector<8x1xf32>
    %32 = vector.broadcast %29 : vector<8x1xf32> to vector<8x8xf32>
    %33 = arith.subf %24, %32 : vector<8x8xf32>
    %34 = math.exp %33 : vector<8x8xf32>
    %c0_25 = arith.constant 0 : index
    %c0_26 = arith.constant 0 : index
    %c0_27 = arith.constant 0 : index
    %35 = vector.load %arg20[%c0_25, %c0_26, %c0_27] : memref<4x8x1xf32, #tpu.memory_space<vmem>>, vector<1x8x1xf32>
    %36 = vector.shape_cast %35 : vector<1x8x1xf32> to vector<8x1xf32>
    %37 = arith.mulf %31, %36 : vector<8x1xf32>
    %cst_28 = arith.constant dense<0.000000e+00> : vector<8xf32>
    %38 = vector.multi_reduction <add>, %34, %cst_28 [1] : vector<8x8xf32> to vector<8xf32>
    %39 = vector.shape_cast %38 : vector<8xf32> to vector<8x1xf32>
    %40 = arith.addf %37, %39 : vector<8x1xf32>
    %c0_29 = arith.constant 0 : index
    %c0_30 = arith.constant 0 : index
    %c0_31 = arith.constant 0 : index
    %41 = vector.load %arg20[%c0_29, %c0_30, %c0_31] : memref<4x8x1xf32, #tpu.memory_space<vmem>>, vector<1x8x1xf32>
    %42 = vector.shape_cast %41 : vector<1x8x1xf32> to vector<8x1xf32>
    %43 = vector.shape_cast %40 : vector<8x1xf32> to vector<1x8x1xf32>
    tpu.vector_store %arg20[%c0_29, %c0_30, %c0_31], %43 {strides = array<i32>} : memref<4x8x1xf32, #tpu.memory_space<vmem>>, vector<1x8x1xf32>,
    %c0_32 = arith.constant 0 : index
    %c0_33 = arith.constant 0 : index
    %c0_34 = arith.constant 0 : index
    %44 = vector.load %arg21[%c0_32, %c0_33, %c0_34] : memref<4x8x8xf32, #tpu.memory_space<vmem>>, vector<1x8x8xf32>
    %45 = vector.shape_cast %44 : vector<1x8x8xf32> to vector<8x8xf32>
    %46 = vector.broadcast %31 : vector<8x1xf32> to vector<8x8xf32>
    %47 = arith.mulf %46, %45 : vector<8x8xf32>
    %cst_35 = arith.constant dense<0.000000e+00> : vector<8x8xf32>
    %48 = tpu.matmul %34, %21, %cst_35 {dimension_numbers = #tpu.dot_dimension_numbers<[1], [0], [0], [1], [0, 0, 1, 1], [], []>} : vector<8x8xf32>, vector<8x8xf32>, vector<8x8xf32> -> vector<8x8xf32>
    %49 = arith.addf %47, %48 : vector<8x8xf32>
    %c0_36 = arith.constant 0 : index
    %c0_37 = arith.constant 0 : index
    %c0_38 = arith.constant 0 : index
    %50 = vector.load %arg21[%c0_36, %c0_37, %c0_38] : memref<4x8x8xf32, #tpu.memory_space<vmem>>, vector<1x8x8xf32>
    %51 = vector.shape_cast %50 : vector<1x8x8xf32> to vector<8x8xf32>
    %52 = vector.shape_cast %49 : vector<8x8xf32> to vector<1x8x8xf32>
    tpu.vector_store %arg21[%c0_36, %c0_37, %c0_38], %52 {strides = array<i32>} : memref<4x8x8xf32, #tpu.memory_space<vmem>>, vector<1x8x8xf32>,
    %c0_39 = arith.constant 0 : index
    %c0_40 = arith.constant 0 : index
    %c0_41 = arith.constant 0 : index
    %53 = vector.load %arg19[%c0_39, %c0_40, %c0_41] : memref<4x8x1xf32, #tpu.memory_space<vmem>>, vector<1x8x1xf32>
    %54 = vector.shape_cast %53 : vector<1x8x1xf32> to vector<8x1xf32>
    %55 = vector.shape_cast %29 : vector<8x1xf32> to vector<1x8x1xf32>
    tpu.vector_store %arg19[%c0_39, %c0_40, %c0_41], %55 {strides = array<i32>} : memref<4x8x1xf32, #tpu.memory_space<vmem>>, vector<1x8x1xf32>,
    %c0_42 = arith.constant 0 : index
    %c8 = arith.constant 8 : index
    %56 = vector.load %arg18[%c0_42, %c8] : memref<8x32xf32, #tpu.memory_space<vmem>>, vector<8x8xf32>
    %57 = vector.extract_strided_slice %9 {offsets = [0, 8], sizes = [8, 8], strides = [1, 1]} : vector<8x32xf32> to vector<8x8xf32>
    %58 = vector.extract_strided_slice %16 {offsets = [0, 8], sizes = [8, 8], strides = [1, 1]} : vector<8x32xf32> to vector<8x8xf32>
    %cst_43 = arith.constant dense<0.000000e+00> : vector<8x8xf32>
    %59 = tpu.matmul %56, %57, %cst_43 {dimension_numbers = #tpu.dot_dimension_numbers<[1], [1], [0], [0], [0, 0, 1, 0], [], []>} : vector<8x8xf32>, vector<8x8xf32>, vector<8x8xf32> -> vector<8x8xf32>
    %60 = vector.broadcast %18 : vector<1x8xf32> to vector<8x8xf32>
    %61 = arith.addf %59, %60 : vector<8x8xf32>
    %c1 = arith.constant 1 : index
    %c0_44 = arith.constant 0 : index
    %c0_45 = arith.constant 0 : index
    %62 = vector.load %arg19[%c1, %c0_44, %c0_45] : memref<4x8x1xf32, #tpu.memory_space<vmem>>, vector<1x8x1xf32>
    %63 = vector.shape_cast %62 : vector<1x8x1xf32> to vector<8x1xf32>
    %cst_46 = arith.constant dense<0xFF800000> : vector<8xf32>
    %64 = vector.multi_reduction <maximumf>, %61, %cst_46 [1] : vector<8x8xf32> to vector<8xf32>
    %65 = vector.shape_cast %64 : vector<8xf32> to vector<8x1xf32>
    %66 = arith.maximumf %63, %65 : vector<8x1xf32>
    %67 = arith.subf %63, %66 : vector<8x1xf32>
    %68 = math.exp %67 : vector<8x1xf32>
    %69 = vector.broadcast %66 : vector<8x1xf32> to vector<8x8xf32>
    %70 = arith.subf %61, %69 : vector<8x8xf32>
    %71 = math.exp %70 : vector<8x8xf32>
    %c1_47 = arith.constant 1 : index
    %c0_48 = arith.constant 0 : index
    %c0_49 = arith.constant 0 : index
    %72 = vector.load %arg20[%c1_47, %c0_48, %c0_49] : memref<4x8x1xf32, #tpu.memory_space<vmem>>, vector<1x8x1xf32>
    %73 = vector.shape_cast %72 : vector<1x8x1xf32> to vector<8x1xf32>
    %74 = arith.mulf %68, %73 : vector<8x1xf32>
    %cst_50 = arith.constant dense<0.000000e+00> : vector<8xf32>
    %75 = vector.multi_reduction <add>, %71, %cst_50 [1] : vector<8x8xf32> to vector<8xf32>
    %76 = vector.shape_cast %75 : vector<8xf32> to vector<8x1xf32>
    %77 = arith.addf %74, %76 : vector<8x1xf32>
    %c1_51 = arith.constant 1 : index
    %c0_52 = arith.constant 0 : index
    %c0_53 = arith.constant 0 : index
    %78 = vector.load %arg20[%c1_51, %c0_52, %c0_53] : memref<4x8x1xf32, #tpu.memory_space<vmem>>, vector<1x8x1xf32>
    %79 = vector.shape_cast %78 : vector<1x8x1xf32> to vector<8x1xf32>
    %80 = vector.shape_cast %77 : vector<8x1xf32> to vector<1x8x1xf32>
    tpu.vector_store %arg20[%c1_51, %c0_52, %c0_53], %80 {strides = array<i32>} : memref<4x8x1xf32, #tpu.memory_space<vmem>>, vector<1x8x1xf32>,
    %c1_54 = arith.constant 1 : index
    %c0_55 = arith.constant 0 : index
    %c0_56 = arith.constant 0 : index
    %81 = vector.load %arg21[%c1_54, %c0_55, %c0_56] : memref<4x8x8xf32, #tpu.memory_space<vmem>>, vector<1x8x8xf32>
    %82 = vector.shape_cast %81 : vector<1x8x8xf32> to vector<8x8xf32>
    %83 = vector.broadcast %68 : vector<8x1xf32> to vector<8x8xf32>
    %84 = arith.mulf %83, %82 : vector<8x8xf32>
    %cst_57 = arith.constant dense<0.000000e+00> : vector<8x8xf32>
    %85 = tpu.matmul %71, %58, %cst_57 {dimension_numbers = #tpu.dot_dimension_numbers<[1], [0], [0], [1], [0, 0, 1, 1], [], []>} : vector<8x8xf32>, vector<8x8xf32>, vector<8x8xf32> -> vector<8x8xf32>
    %86 = arith.addf %84, %85 : vector<8x8xf32>
    %c1_58 = arith.constant 1 : index
    %c0_59 = arith.constant 0 : index
    %c0_60 = arith.constant 0 : index
    %87 = vector.load %arg21[%c1_58, %c0_59, %c0_60] : memref<4x8x8xf32, #tpu.memory_space<vmem>>, vector<1x8x8xf32>
    %88 = vector.shape_cast %87 : vector<1x8x8xf32> to vector<8x8xf32>
    %89 = vector.shape_cast %86 : vector<8x8xf32> to vector<1x8x8xf32>
    tpu.vector_store %arg21[%c1_58, %c0_59, %c0_60], %89 {strides = array<i32>} : memref<4x8x8xf32, #tpu.memory_space<vmem>>, vector<1x8x8xf32>,
    %c1_61 = arith.constant 1 : index
    %c0_62 = arith.constant 0 : index
    %c0_63 = arith.constant 0 : index
    %90 = vector.load %arg19[%c1_61, %c0_62, %c0_63] : memref<4x8x1xf32, #tpu.memory_space<vmem>>, vector<1x8x1xf32>
    %91 = vector.shape_cast %90 : vector<1x8x1xf32> to vector<8x1xf32>
    %92 = vector.shape_cast %66 : vector<8x1xf32> to vector<1x8x1xf32>
    tpu.vector_store %arg19[%c1_61, %c0_62, %c0_63], %92 {strides = array<i32>} : memref<4x8x1xf32, #tpu.memory_space<vmem>>, vector<1x8x1xf32>,
    %c0_64 = arith.constant 0 : index
    %c16 = arith.constant 16 : index
    %93 = vector.load %arg18[%c0_64, %c16] : memref<8x32xf32, #tpu.memory_space<vmem>>, vector<8x8xf32>
    %94 = vector.extract_strided_slice %9 {offsets = [0, 16], sizes = [8, 8], strides = [1, 1]} : vector<8x32xf32> to vector<8x8xf32>
    %95 = vector.extract_strided_slice %16 {offsets = [0, 16], sizes = [8, 8], strides = [1, 1]} : vector<8x32xf32> to vector<8x8xf32>
    %cst_65 = arith.constant dense<0.000000e+00> : vector<8x8xf32>
    %96 = tpu.matmul %93, %94, %cst_65 {dimension_numbers = #tpu.dot_dimension_numbers<[1], [1], [0], [0], [0, 0, 1, 0], [], []>} : vector<8x8xf32>, vector<8x8xf32>, vector<8x8xf32> -> vector<8x8xf32>
    %97 = vector.broadcast %18 : vector<1x8xf32> to vector<8x8xf32>
    %98 = arith.addf %96, %97 : vector<8x8xf32>
    %c2 = arith.constant 2 : index
    %c0_66 = arith.constant 0 : index
    %c0_67 = arith.constant 0 : index
    %99 = vector.load %arg19[%c2, %c0_66, %c0_67] : memref<4x8x1xf32, #tpu.memory_space<vmem>>, vector<1x8x1xf32>
    %100 = vector.shape_cast %99 : vector<1x8x1xf32> to vector<8x1xf32>
    %cst_68 = arith.constant dense<0xFF800000> : vector<8xf32>
    %101 = vector.multi_reduction <maximumf>, %98, %cst_68 [1] : vector<8x8xf32> to vector<8xf32>
    %102 = vector.shape_cast %101 : vector<8xf32> to vector<8x1xf32>
    %103 = arith.maximumf %100, %102 : vector<8x1xf32>
    %104 = arith.subf %100, %103 : vector<8x1xf32>
    %105 = math.exp %104 : vector<8x1xf32>
    %106 = vector.broadcast %103 : vector<8x1xf32> to vector<8x8xf32>
    %107 = arith.subf %98, %106 : vector<8x8xf32>
    %108 = math.exp %107 : vector<8x8xf32>
    %c2_69 = arith.constant 2 : index
    %c0_70 = arith.constant 0 : index
    %c0_71 = arith.constant 0 : index
    %109 = vector.load %arg20[%c2_69, %c0_70, %c0_71] : memref<4x8x1xf32, #tpu.memory_space<vmem>>, vector<1x8x1xf32>
    %110 = vector.shape_cast %109 : vector<1x8x1xf32> to vector<8x1xf32>
    %111 = arith.mulf %105, %110 : vector<8x1xf32>
    %cst_72 = arith.constant dense<0.000000e+00> : vector<8xf32>
    %112 = vector.multi_reduction <add>, %108, %cst_72 [1] : vector<8x8xf32> to vector<8xf32>
    %113 = vector.shape_cast %112 : vector<8xf32> to vector<8x1xf32>
    %114 = arith.addf %111, %113 : vector<8x1xf32>
    %c2_73 = arith.constant 2 : index
    %c0_74 = arith.constant 0 : index
    %c0_75 = arith.constant 0 : index
    %115 = vector.load %arg20[%c2_73, %c0_74, %c0_75] : memref<4x8x1xf32, #tpu.memory_space<vmem>>, vector<1x8x1xf32>
    %116 = vector.shape_cast %115 : vector<1x8x1xf32> to vector<8x1xf32>
    %117 = vector.shape_cast %114 : vector<8x1xf32> to vector<1x8x1xf32>
    tpu.vector_store %arg20[%c2_73, %c0_74, %c0_75], %117 {strides = array<i32>} : memref<4x8x1xf32, #tpu.memory_space<vmem>>, vector<1x8x1xf32>,
    %c2_76 = arith.constant 2 : index
    %c0_77 = arith.constant 0 : index
    %c0_78 = arith.constant 0 : index
    %118 = vector.load %arg21[%c2_76, %c0_77, %c0_78] : memref<4x8x8xf32, #tpu.memory_space<vmem>>, vector<1x8x8xf32>
    %119 = vector.shape_cast %118 : vector<1x8x8xf32> to vector<8x8xf32>
    %120 = vector.broadcast %105 : vector<8x1xf32> to vector<8x8xf32>
    %121 = arith.mulf %120, %119 : vector<8x8xf32>
    %cst_79 = arith.constant dense<0.000000e+00> : vector<8x8xf32>
    %122 = tpu.matmul %108, %95, %cst_79 {dimension_numbers = #tpu.dot_dimension_numbers<[1], [0], [0], [1], [0, 0, 1, 1], [], []>} : vector<8x8xf32>, vector<8x8xf32>, vector<8x8xf32> -> vector<8x8xf32>
    %123 = arith.addf %121, %122 : vector<8x8xf32>
    %c2_80 = arith.constant 2 : index
    %c0_81 = arith.constant 0 : index
    %c0_82 = arith.constant 0 : index
    %124 = vector.load %arg21[%c2_80, %c0_81, %c0_82] : memref<4x8x8xf32, #tpu.memory_space<vmem>>, vector<1x8x8xf32>
    %125 = vector.shape_cast %124 : vector<1x8x8xf32> to vector<8x8xf32>
    %126 = vector.shape_cast %123 : vector<8x8xf32> to vector<1x8x8xf32>
    tpu.vector_store %arg21[%c2_80, %c0_81, %c0_82], %126 {strides = array<i32>} : memref<4x8x8xf32, #tpu.memory_space<vmem>>, vector<1x8x8xf32>,
    %c2_83 = arith.constant 2 : index
    %c0_84 = arith.constant 0 : index
    %c0_85 = arith.constant 0 : index
    %127 = vector.load %arg19[%c2_83, %c0_84, %c0_85] : memref<4x8x1xf32, #tpu.memory_space<vmem>>, vector<1x8x1xf32>
    %128 = vector.shape_cast %127 : vector<1x8x1xf32> to vector<8x1xf32>
    %129 = vector.shape_cast %103 : vector<8x1xf32> to vector<1x8x1xf32>
    tpu.vector_store %arg19[%c2_83, %c0_84, %c0_85], %129 {strides = array<i32>} : memref<4x8x1xf32, #tpu.memory_space<vmem>>, vector<1x8x1xf32>,
    %c0_86 = arith.constant 0 : index
    %c24 = arith.constant 24 : index
    %130 = vector.load %arg18[%c0_86, %c24] : memref<8x32xf32, #tpu.memory_space<vmem>>, vector<8x8xf32>
    %131 = vector.extract_strided_slice %9 {offsets = [0, 24], sizes = [8, 8], strides = [1, 1]} : vector<8x32xf32> to vector<8x8xf32>
    %132 = vector.extract_strided_slice %16 {offsets = [0, 24], sizes = [8, 8], strides = [1, 1]} : vector<8x32xf32> to vector<8x8xf32>
    %cst_87 = arith.constant dense<0.000000e+00> : vector<8x8xf32>
    %133 = tpu.matmul %130, %131, %cst_87 {dimension_numbers = #tpu.dot_dimension_numbers<[1], [1], [0], [0], [0, 0, 1, 0], [], []>} : vector<8x8xf32>, vector<8x8xf32>, vector<8x8xf32> -> vector<8x8xf32>
    %134 = vector.broadcast %18 : vector<1x8xf32> to vector<8x8xf32>
    %135 = arith.addf %133, %134 : vector<8x8xf32>
    %c3 = arith.constant 3 : index
    %c0_88 = arith.constant 0 : index
    %c0_89 = arith.constant 0 : index
    %136 = vector.load %arg19[%c3, %c0_88, %c0_89] : memref<4x8x1xf32, #tpu.memory_space<vmem>>, vector<1x8x1xf32>
    %137 = vector.shape_cast %136 : vector<1x8x1xf32> to vector<8x1xf32>
    %cst_90 = arith.constant dense<0xFF800000> : vector<8xf32>
    %138 = vector.multi_reduction <maximumf>, %135, %cst_90 [1] : vector<8x8xf32> to vector<8xf32>
    %139 = vector.shape_cast %138 : vector<8xf32> to vector<8x1xf32>
    %140 = arith.maximumf %137, %139 : vector<8x1xf32>
    %141 = arith.subf %137, %140 : vector<8x1xf32>
    %142 = math.exp %141 : vector<8x1xf32>
    %143 = vector.broadcast %140 : vector<8x1xf32> to vector<8x8xf32>
    %144 = arith.subf %135, %143 : vector<8x8xf32>
    %145 = math.exp %144 : vector<8x8xf32>
    %c3_91 = arith.constant 3 : index
    %c0_92 = arith.constant 0 : index
    %c0_93 = arith.constant 0 : index
    %146 = vector.load %arg20[%c3_91, %c0_92, %c0_93] : memref<4x8x1xf32, #tpu.memory_space<vmem>>, vector<1x8x1xf32>
    %147 = vector.shape_cast %146 : vector<1x8x1xf32> to vector<8x1xf32>
    %148 = arith.mulf %142, %147 : vector<8x1xf32>
    %cst_94 = arith.constant dense<0.000000e+00> : vector<8xf32>
    %149 = vector.multi_reduction <add>, %145, %cst_94 [1] : vector<8x8xf32> to vector<8xf32>
    %150 = vector.shape_cast %149 : vector<8xf32> to vector<8x1xf32>
    %151 = arith.addf %148, %150 : vector<8x1xf32>
    %c3_95 = arith.constant 3 : index
    %c0_96 = arith.constant 0 : index
    %c0_97 = arith.constant 0 : index
    %152 = vector.load %arg20[%c3_95, %c0_96, %c0_97] : memref<4x8x1xf32, #tpu.memory_space<vmem>>, vector<1x8x1xf32>
    %153 = vector.shape_cast %152 : vector<1x8x1xf32> to vector<8x1xf32>
    %154 = vector.shape_cast %151 : vector<8x1xf32> to vector<1x8x1xf32>
    tpu.vector_store %arg20[%c3_95, %c0_96, %c0_97], %154 {strides = array<i32>} : memref<4x8x1xf32, #tpu.memory_space<vmem>>, vector<1x8x1xf32>,
    %c3_98 = arith.constant 3 : index
    %c0_99 = arith.constant 0 : index
    %c0_100 = arith.constant 0 : index
    %155 = vector.load %arg21[%c3_98, %c0_99, %c0_100] : memref<4x8x8xf32, #tpu.memory_space<vmem>>, vector<1x8x8xf32>
    %156 = vector.shape_cast %155 : vector<1x8x8xf32> to vector<8x8xf32>
    %157 = vector.broadcast %142 : vector<8x1xf32> to vector<8x8xf32>
    %158 = arith.mulf %157, %156 : vector<8x8xf32>
    %cst_101 = arith.constant dense<0.000000e+00> : vector<8x8xf32>
    %159 = tpu.matmul %145, %132, %cst_101 {dimension_numbers = #tpu.dot_dimension_numbers<[1], [0], [0], [1], [0, 0, 1, 1], [], []>} : vector<8x8xf32>, vector<8x8xf32>, vector<8x8xf32> -> vector<8x8xf32>
    %160 = arith.addf %158, %159 : vector<8x8xf32>
    %c3_102 = arith.constant 3 : index
    %c0_103 = arith.constant 0 : index
    %c0_104 = arith.constant 0 : index
    %161 = vector.load %arg21[%c3_102, %c0_103, %c0_104] : memref<4x8x8xf32, #tpu.memory_space<vmem>>, vector<1x8x8xf32>
    %162 = vector.shape_cast %161 : vector<1x8x8xf32> to vector<8x8xf32>
    %163 = vector.shape_cast %160 : vector<8x8xf32> to vector<1x8x8xf32>
    tpu.vector_store %arg21[%c3_102, %c0_103, %c0_104], %163 {strides = array<i32>} : memref<4x8x8xf32, #tpu.memory_space<vmem>>, vector<1x8x8xf32>,
    %c3_105 = arith.constant 3 : index
    %c0_106 = arith.constant 0 : index
    %c0_107 = arith.constant 0 : index
    %164 = vector.load %arg19[%c3_105, %c0_106, %c0_107] : memref<4x8x1xf32, #tpu.memory_space<vmem>>, vector<1x8x1xf32>
    %165 = vector.shape_cast %164 : vector<1x8x1xf32> to vector<8x1xf32>
    %166 = vector.shape_cast %140 : vector<8x1xf32> to vector<1x8x1xf32>
    tpu.vector_store %arg19[%c3_105, %c0_106, %c0_107], %166 {strides = array<i32>} : memref<4x8x1xf32, #tpu.memory_space<vmem>>, vector<1x8x1xf32>,
    %c0_i32_108 = arith.constant 0 : i32
    %167 = arith.cmpi eq, %arg2, %c0_i32_108 : i32
    %168 = arith.extui %167 : i1 to i32
    %c0_i32_109 = arith.constant 0 : i32
    %169 = arith.cmpi ne, %168, %c0_i32_109 : i32
    scf.if %169 {
      %cst_110 = arith.constant 0.000000e+00 : f32
      %170 = vector.broadcast %cst_110 : f32 to vector<8x32xf32>
      %c0_111 = arith.constant 0 : index
      %c0_112 = arith.constant 0 : index
      %c0_113 = arith.constant 0 : index
      %171 = vector.load %arg21[%c0_111, %c0_112, %c0_113] : memref<4x8x8xf32, #tpu.memory_space<vmem>>, vector<1x8x8xf32>
      %172 = vector.shape_cast %171 : vector<1x8x8xf32> to vector<8x8xf32>
      %c0_114 = arith.constant 0 : index
      %c0_115 = arith.constant 0 : index
      %c0_116 = arith.constant 0 : index
      %173 = vector.load %arg20[%c0_114, %c0_115, %c0_116] : memref<4x8x1xf32, #tpu.memory_space<vmem>>, vector<1x8x1xf32>
      %174 = vector.shape_cast %173 : vector<1x8x1xf32> to vector<8x1xf32>
      %175 = vector.broadcast %174 : vector<8x1xf32> to vector<8x8xf32>
      %176 = arith.divf %172, %175 : vector<8x8xf32>
      %c0_117 = arith.constant 0 : index
      %c0_118 = arith.constant 0 : index
      %177 = vector.load %arg10[%c0_117, %c0_118] : memref<32x32xf32, #tpu.memory_space<vmem>>, vector<8x32xf32>
      %cst_119 = arith.constant dense<0.000000e+00> : vector<8x32xf32>
      %178 = tpu.matmul %176, %177, %cst_119 {dimension_numbers = #tpu.dot_dimension_numbers<[1], [0], [0], [1], [0, 0, 1, 1], [], []>} : vector<8x8xf32>, vector<8x32xf32>, vector<8x32xf32> -> vector<8x32xf32>
      %179 = arith.addf %170, %178 : vector<8x32xf32>
      %c1_120 = arith.constant 1 : index
      %c0_121 = arith.constant 0 : index
      %c0_122 = arith.constant 0 : index
      %180 = vector.load %arg21[%c1_120, %c0_121, %c0_122] : memref<4x8x8xf32, #tpu.memory_space<vmem>>, vector<1x8x8xf32>
      %181 = vector.shape_cast %180 : vector<1x8x8xf32> to vector<8x8xf32>
      %c1_123 = arith.constant 1 : index
      %c0_124 = arith.constant 0 : index
      %c0_125 = arith.constant 0 : index
      %182 = vector.load %arg20[%c1_123, %c0_124, %c0_125] : memref<4x8x1xf32, #tpu.memory_space<vmem>>, vector<1x8x1xf32>
      %183 = vector.shape_cast %182 : vector<1x8x1xf32> to vector<8x1xf32>
      %184 = vector.broadcast %183 : vector<8x1xf32> to vector<8x8xf32>
      %185 = arith.divf %181, %184 : vector<8x8xf32>
      %c8_126 = arith.constant 8 : index
      %c0_127 = arith.constant 0 : index
      %186 = vector.load %arg10[%c8_126, %c0_127] : memref<32x32xf32, #tpu.memory_space<vmem>>, vector<8x32xf32>
      %cst_128 = arith.constant dense<0.000000e+00> : vector<8x32xf32>
      %187 = tpu.matmul %185, %186, %cst_128 {dimension_numbers = #tpu.dot_dimension_numbers<[1], [0], [0], [1], [0, 0, 1, 1], [], []>} : vector<8x8xf32>, vector<8x32xf32>, vector<8x32xf32> -> vector<8x32xf32>
      %188 = arith.addf %179, %187 : vector<8x32xf32>
      %c2_129 = arith.constant 2 : index
      %c0_130 = arith.constant 0 : index
      %c0_131 = arith.constant 0 : index
      %189 = vector.load %arg21[%c2_129, %c0_130, %c0_131] : memref<4x8x8xf32, #tpu.memory_space<vmem>>, vector<1x8x8xf32>
      %190 = vector.shape_cast %189 : vector<1x8x8xf32> to vector<8x8xf32>
      %c2_132 = arith.constant 2 : index
      %c0_133 = arith.constant 0 : index
      %c0_134 = arith.constant 0 : index
      %191 = vector.load %arg20[%c2_132, %c0_133, %c0_134] : memref<4x8x1xf32, #tpu.memory_space<vmem>>, vector<1x8x1xf32>
      %192 = vector.shape_cast %191 : vector<1x8x1xf32> to vector<8x1xf32>
      %193 = vector.broadcast %192 : vector<8x1xf32> to vector<8x8xf32>
      %194 = arith.divf %190, %193 : vector<8x8xf32>
      %c16_135 = arith.constant 16 : index
      %c0_136 = arith.constant 0 : index
      %195 = vector.load %arg10[%c16_135, %c0_136] : memref<32x32xf32, #tpu.memory_space<vmem>>, vector<8x32xf32>
      %cst_137 = arith.constant dense<0.000000e+00> : vector<8x32xf32>
      %196 = tpu.matmul %194, %195, %cst_137 {dimension_numbers = #tpu.dot_dimension_numbers<[1], [0], [0], [1], [0, 0, 1, 1], [], []>} : vector<8x8xf32>, vector<8x32xf32>, vector<8x32xf32> -> vector<8x32xf32>
      %197 = arith.addf %188, %196 : vector<8x32xf32>
      %c3_138 = arith.constant 3 : index
      %c0_139 = arith.constant 0 : index
      %c0_140 = arith.constant 0 : index
      %198 = vector.load %arg21[%c3_138, %c0_139, %c0_140] : memref<4x8x8xf32, #tpu.memory_space<vmem>>, vector<1x8x8xf32>
      %199 = vector.shape_cast %198 : vector<1x8x8xf32> to vector<8x8xf32>
      %c3_141 = arith.constant 3 : index
      %c0_142 = arith.constant 0 : index
      %c0_143 = arith.constant 0 : index
      %200 = vector.load %arg20[%c3_141, %c0_142, %c0_143] : memref<4x8x1xf32, #tpu.memory_space<vmem>>, vector<1x8x1xf32>
      %201 = vector.shape_cast %200 : vector<1x8x1xf32> to vector<8x1xf32>
      %202 = vector.broadcast %201 : vector<8x1xf32> to vector<8x8xf32>
      %203 = arith.divf %199, %202 : vector<8x8xf32>
      %c24_144 = arith.constant 24 : index
      %c0_145 = arith.constant 0 : index
      %204 = vector.load %arg10[%c24_144, %c0_145] : memref<32x32xf32, #tpu.memory_space<vmem>>, vector<8x32xf32>
      %cst_146 = arith.constant dense<0.000000e+00> : vector<8x32xf32>
      %205 = tpu.matmul %203, %204, %cst_146 {dimension_numbers = #tpu.dot_dimension_numbers<[1], [0], [0], [1], [0, 0, 1, 1], [], []>} : vector<8x8xf32>, vector<8x32xf32>, vector<8x32xf32> -> vector<8x32xf32>
      %206 = arith.addf %197, %205 : vector<8x32xf32>
      %c0_147 = arith.constant 0 : index
      %c0_148 = arith.constant 0 : index
      %207 = vector.load %arg14[%c0_147, %c0_148] : memref<1x32xf32, #tpu.memory_space<vmem>>, vector<1x32xf32>
      %208 = vector.broadcast %207 : vector<1x32xf32> to vector<8x32xf32>
      %209 = arith.addf %206, %208 : vector<8x32xf32>
      %c0_149 = arith.constant 0 : index
      %c0_150 = arith.constant 0 : index
      %c0_151 = arith.constant 0 : index
      %210 = vector.load %arg3[%c0_149, %c0_150, %c0_151] : memref<1x8x32xf32, #tpu.memory_space<vmem>>, vector<1x8x32xf32>
      %211 = vector.shape_cast %210 : vector<1x8x32xf32> to vector<8x32xf32>
      %212 = arith.addf %211, %209 : vector<8x32xf32>
      %cst_152 = arith.constant dense<0.000000e+00> : vector<8xf32>
      %213 = vector.multi_reduction <add>, %212, %cst_152 [1] : vector<8x32xf32> to vector<8xf32>
      %214 = vector.shape_cast %213 : vector<8xf32> to vector<8x1xf32>
      %cst_153 = arith.constant 3.200000e+01 : f32
      %215 = vector.broadcast %cst_153 : f32 to vector<8x1xf32>
      %216 = arith.divf %214, %215 : vector<8x1xf32>
      %217 = vector.broadcast %216 : vector<8x1xf32> to vector<8x32xf32>
      %218 = arith.subf %212, %217 : vector<8x32xf32>
      %219 = arith.mulf %218, %218 : vector<8x32xf32>
      %cst_154 = arith.constant dense<0.000000e+00> : vector<8xf32>
      %220 = vector.multi_reduction <add>, %219, %cst_154 [1] : vector<8x32xf32> to vector<8xf32>
      %221 = vector.shape_cast %220 : vector<8xf32> to vector<8x1xf32>
      %cst_155 = arith.constant 3.200000e+01 : f32
      %222 = vector.broadcast %cst_155 : f32 to vector<8x1xf32>
      %223 = arith.divf %221, %222 : vector<8x1xf32>
      %224 = vector.broadcast %216 : vector<8x1xf32> to vector<8x32xf32>
      %225 = arith.subf %212, %224 : vector<8x32xf32>
      %cst_156 = arith.constant 9.99999974E-6 : f32
      %226 = vector.broadcast %cst_156 : f32 to vector<8x1xf32>
      %227 = arith.addf %223, %226 : vector<8x1xf32>
      %228 = math.rsqrt %227 : vector<8x1xf32>
      %229 = vector.broadcast %228 : vector<8x1xf32> to vector<8x32xf32>
      %230 = arith.mulf %225, %229 : vector<8x32xf32>
      %c0_157 = arith.constant 0 : index
      %c0_158 = arith.constant 0 : index
      %231 = vector.load %arg15[%c0_157, %c0_158] : memref<1x32xf32, #tpu.memory_space<vmem>>, vector<1x32xf32>
      %232 = vector.broadcast %231 : vector<1x32xf32> to vector<8x32xf32>
      %233 = arith.mulf %230, %232 : vector<8x32xf32>
      %c0_159 = arith.constant 0 : index
      %c0_160 = arith.constant 0 : index
      %234 = vector.load %arg16[%c0_159, %c0_160] : memref<1x32xf32, #tpu.memory_space<vmem>>, vector<1x32xf32>
      %235 = vector.broadcast %234 : vector<1x32xf32> to vector<8x32xf32>
      %236 = arith.addf %233, %235 : vector<8x32xf32>
      %c0_161 = arith.constant 0 : index
      %c0_162 = arith.constant 0 : index
      %c0_163 = arith.constant 0 : index
      %237 = vector.load %arg17[%c0_161, %c0_162, %c0_163] : memref<1x8x32xf32, #tpu.memory_space<vmem>>, vector<1x8x32xf32>
      %238 = vector.shape_cast %237 : vector<1x8x32xf32> to vector<8x32xf32>
      %239 = vector.shape_cast %236 : vector<8x32xf32> to vector<1x8x32xf32>
      tpu.vector_store %arg17[%c0_161, %c0_162, %c0_163], %239 {strides = array<i32>} : memref<1x8x32xf32, #tpu.memory_space<vmem>>, vector<1x8x32xf32>,
    } else {
    }
    return
  }
  func.func @transform_0(%arg0: i32, %arg1: i32, %arg2: i32) -> (i32, i32, i32) {
    %c0_i32 = arith.constant 0 : i32
    %c0_i32_0 = arith.constant 0 : i32
    return %arg0, %arg1, %c0_i32 : i32, i32, i32
  }
  func.func @transform_1(%arg0: i32, %arg1: i32, %arg2: i32) -> (i32, i32, i32) {
    %c0_i32 = arith.constant 0 : i32
    %c0_i32_0 = arith.constant 0 : i32
    return %arg0, %arg2, %c0_i32 : i32, i32, i32
  }
  func.func @transform_2(%arg0: i32, %arg1: i32, %arg2: i32) -> (i32, i32, i32) {
    %c0_i32 = arith.constant 0 : i32
    %c0_i32_0 = arith.constant 0 : i32
    return %arg0, %arg2, %c0_i32 : i32, i32, i32
  }
  func.func @transform_3(%arg0: i32, %arg1: i32, %arg2: i32) -> (i32, i32, i32) {
    %c0_i32 = arith.constant 0 : i32
    %c0_i32_0 = arith.constant 0 : i32
    return %arg0, %c0_i32, %arg2 : i32, i32, i32
  }
  func.func @transform_4(%arg0: i32, %arg1: i32, %arg2: i32) -> (i32, i32) {
    %c0_i32 = arith.constant 0 : i32
    %c0_i32_0 = arith.constant 0 : i32
    %c0_i32_1 = arith.constant 0 : i32
    return %c0_i32, %c0_i32_0 : i32, i32
  }
  func.func @transform_5(%arg0: i32, %arg1: i32, %arg2: i32) -> (i32, i32) {
    %c0_i32 = arith.constant 0 : i32
    %c0_i32_0 = arith.constant 0 : i32
    %c0_i32_1 = arith.constant 0 : i32
    return %c0_i32, %c0_i32_0 : i32, i32
  }
  func.func @transform_6(%arg0: i32, %arg1: i32, %arg2: i32) -> (i32, i32) {
    %c0_i32 = arith.constant 0 : i32
    %c0_i32_0 = arith.constant 0 : i32
    %c0_i32_1 = arith.constant 0 : i32
    return %c0_i32, %c0_i32_0 : i32, i32
  }
  func.func @transform_7(%arg0: i32, %arg1: i32, %arg2: i32) -> (i32, i32) {
    %c0_i32 = arith.constant 0 : i32
    %c0_i32_0 = arith.constant 0 : i32
    %c0_i32_1 = arith.constant 0 : i32
    return %c0_i32, %c0_i32_0 : i32, i32
  }
  func.func @transform_8(%arg0: i32, %arg1: i32, %arg2: i32) -> (i32, i32) {
    %c0_i32 = arith.constant 0 : i32
    %c0_i32_0 = arith.constant 0 : i32
    %c0_i32_1 = arith.constant 0 : i32
    return %c0_i32, %c0_i32_0 : i32, i32
  }
  func.func @transform_9(%arg0: i32, %arg1: i32, %arg2: i32) -> (i32, i32) {
    %c0_i32 = arith.constant 0 : i32
    %c0_i32_0 = arith.constant 0 : i32
    %c0_i32_1 = arith.constant 0 : i32
    return %c0_i32, %c0_i32_0 : i32, i32
  }
  func.func @transform_10(%arg0: i32, %arg1: i32, %arg2: i32) -> (i32, i32) {
    %c0_i32 = arith.constant 0 : i32
    %c0_i32_0 = arith.constant 0 : i32
    %c0_i32_1 = arith.constant 0 : i32
    return %c0_i32, %c0_i32_0 : i32, i32
  }
  func.func @transform_11(%arg0: i32, %arg1: i32, %arg2: i32) -> (i32, i32) {
    %c0_i32 = arith.constant 0 : i32
    %c0_i32_0 = arith.constant 0 : i32
    %c0_i32_1 = arith.constant 0 : i32
    return %c0_i32, %c0_i32_0 : i32, i32
  }
  func.func @transform_12(%arg0: i32, %arg1: i32, %arg2: i32) -> (i32, i32) {
    %c0_i32 = arith.constant 0 : i32
    %c0_i32_0 = arith.constant 0 : i32
    %c0_i32_1 = arith.constant 0 : i32
    return %c0_i32, %c0_i32_0 : i32, i32
  }
  func.func @transform_13(%arg0: i32, %arg1: i32, %arg2: i32) -> (i32, i32) {
    %c0_i32 = arith.constant 0 : i32
    %c0_i32_0 = arith.constant 0 : i32
    %c0_i32_1 = arith.constant 0 : i32
    return %c0_i32, %c0_i32_0 : i32, i32
  }
  func.func @transform_14(%arg0: i32, %arg1: i32, %arg2: i32) -> (i32, i32, i32) {
    %c0_i32 = arith.constant 0 : i32
    %c0_i32_0 = arith.constant 0 : i32
    return %arg0, %arg1, %c0_i32 : i32, i32, i32
  }
}

</mosaic_0001>

<bundles_post_ra>
// kernel: tpu_custom_call.1
= control target key start
LH: loop header
LB: loop body
LE: loop exit
PB: predicated region body
PF: predicated region fallthrough
CT: control target
= control target key end

     0   :  { %s4188_s0 = inlined_call_operand.hbm [shape: f32[2,8,32], index: 0, kind: input, shape index: {}]   ;;  %s4189_s1 = inlined_call_operand.hbm [shape: f32[2,8,32], index: 1, kind: input, shape index: {}]   ;;  %s4190_s2 = inlined_call_operand.hbm [shape: f32[2,8,32], index: 2, kind: input, shape index: {}]   ;;  %s4191_s3 = inlined_call_operand.hbm [shape: f32[2,1,8], index: 3, kind: input, shape index: {}]   ;;  %s4192_s4 = inlined_call_operand.hbm [shape: f32[32,32], index: 4, kind: input, shape index: {}]   ;;  %s4193_s5 = inlined_call_operand.hbm [shape: f32[32,32], index: 5, kind: input, shape index: {}]   ;;  %s4194_s6 = inlined_call_operand.hbm [shape: f32[32,32], index: 6, kind: input, shape index: {}]   ;;  %s4195_s7 = inlined_call_operand.hbm [shape: f32[32,32], index: 7, kind: input, shape index: {}]   ;;  %s4196_s8 = inlined_call_operand.hbm [shape: f32[1,32], index: 8, kind: input, shape index: {}]   ;;  %s4197_s9 = inlined_call_operand.hbm [shape: f32[1,32], index: 9, kind: input, shape index: {}]   ;;  %s4198_s10 = inlined_call_operand.hbm [shape: f32[1,32], index: 10, kind: input, shape index: {}]   ;;  %s4199_s11 = inlined_call_operand.hbm [shape: f32[1,32], index: 11, kind: input, shape index: {}]   ;;  %s4200_s12 = inlined_call_operand.hbm [shape: f32[1,32], index: 12, kind: input, shape index: {}]   ;;  %s4201_s13 = inlined_call_operand.hbm [shape: f32[1,32], index: 13, kind: input, shape index: {}]   ;;  %s4202_s14 = inlined_call_operand.hbm [shape: f32[2,8,32], index: 14, kind: output, shape index: {}]  }
   0x1   :  { %4228 = sst [smem:[#allocation46_spill]] %s4188_s0 }
   0x2   :  { %4229 = sst [smem:[#allocation47_spill]] %s4189_s1 }
   0x3   :  { %4230 = sst [smem:[#allocation48_spill]] %s4190_s2 }
   0x4   :  { %4231 = sst [smem:[#allocation49_spill]] %s4191_s3 }
   0x5   :  { %4232 = sst [smem:[#allocation50_spill]] %s4192_s4 }
   0x6   :  { %4233 = sst [smem:[#allocation51_spill]] %s4193_s5 }
   0x7   :  { %4234 = sst [smem:[#allocation52_spill]] %s4194_s6 }
   0x8   :  { %4235 = sst [smem:[#allocation53_spill]] %s4195_s7 }
   0x9   :  { %4236 = sst [smem:[#allocation54_spill]] %s4197_s9 }
   0xa   :  { %4237 = sst [smem:[#allocation55_spill]] %s4199_s11 }
   0xb   :  { %4238 = sst [smem:[#allocation56_spill]] %s4200_s12 }
   0xc   :  { %4239 = sst [smem:[#allocation57_spill]] %s4201_s13 }
   0xd   :  { %4240 = sst [smem:[#allocation58_spill]] %s4202_s14 }
   0xe   :  { %19 = vsyncpa [#allocation7], 0 }
   0xf   :  { %21 = vsyncpa [#allocation7 + $0x1], 0 }
  0x10   :  { %22 = vsyncpa [#allocation10], 0 }
  0x11   :  { %24 = vsyncpa [#allocation10 + $0x1], 0 }
  0x12   :  { %25 = vsyncpa [#allocation13], 0 }
  0x13   :  { %27 = vsyncpa [#allocation13 + $0x1], 0 }
  0x14   :  { %28 = vsyncpa [#allocation16], 0 }
  0x15   :  { %29 = vsyncpa [#allocation19], 0 }
  0x16   :  { %30 = vsyncpa [#allocation22], 0 }
  0x17   :  { %31 = vsyncpa [#allocation25], 0 }
  0x18   :  { %32 = vsyncpa [#allocation28], 0 }
  0x19   :  { %33 = vsyncpa [#allocation8], 0 }
  0x1a   :  { %35 = vsyncpa [#allocation8 + $0x1], 0  ;;  %s3484_s29 = smov 0   ;;  %s3486_s30 = smov 0  }
  0x1b   :  { %s3488_s15 = smov 0   ;;  %s3490_s16 = smov 0  }
  0x1c   :  { %s3492_s17 = smov 0   ;;  %s3494_s18 = smov 0  }
  0x1d LB: > { %4241 = sst [smem:[#allocation40_spill]] %s3370_s15  ;;  %s3515_s19 = sadd.s32 4294967295, %s3382_s18   ;;  %s3382_s18 = sphi %s3494_s18, %s41_s18   ;;  %s3378_s17 = sphi %s3492_s17, %s4306_s17   ;;  %s3374_s16 = sphi %s3490_s16, %s4305_s16   ;;  %s3370_s15 = sphi %s3488_s15, %s4301_s15   ;;  %s3366_s30 = sphi %s3486_s30, %s4304_s30   ;;  %s3362_s29 = sphi %s3484_s29, %s4303_s29  }
  0x1e   : > { %4242 = sst [smem:[#allocation41_spill]] %s3374_s16  ;;  %p2438_p0 = scmp.ge.s32.totalorder %s3382_s18, 1 }
  0x1f   : > { %p4210_p1 = scmp.eq.s32.totalorder %s3515_s19, 0  ;;  %p415_p2 = scmp.lt.s32.totalorder %s3382_s18, 3 }
  0x20   : > { %s3384_s21 = smov [#allocation14]   ;;  %s3385_s24 = smov [#allocation15]  }
  0x21   : > { %p3520_p3 = pnand %p2438_p0, %p415_p2  ;;  %s427_s22 = sshll.u32 %s3384_s21, 4  ;;  %s3524_s22 = int_to_ptr.vmem [resolvable:$true] %s427_s22 }
  0x22   : > { %s440_s25 = sshll.u32 %s3385_s24, 4  ;;  %s3386_s26 = smov [#allocation18]   ;;  %s3535_s25 = int_to_ptr.vmem [resolvable:$true] %s440_s25 }
  0x23   : > { %s4243_s20 = scalar_select %p3520_p3, 1, 0 }
  0x24   : > { %p2702_p4 = pneg %p3520_p3  ;;  %s3537_s27 = sshll.u32 %s3386_s26, 4  ;;  %s467_s27 = int_to_ptr.vmem [resolvable:$true] %s3537_s27 }
  0x25   : > { %4244 = sst [smem:[#allocation42_spill]] %s4243_s20  ;;  %s4246_s4 = sld [smem:[#allocation50_spill]] }
  0x26   : > { %p3531_p6 = pnand %p2702_p4, %p4210_p1 }
  0x28   : > { %s4245_s23 = scalar_select %p3531_p6, 1, 0 }
  0x29   : > { %p3547_p8 = pneg %p3531_p6 }
  0x2b   : > { %s2868_s14 = scalar_lea.hbm %s4246_s4, 512 }
  0x2c   : > { %p2869_p7 = scmp.ne.s32.totalorder %s4246_s4, %s2868_s14  ;;  %p2875_p11 = scmp.lt.u32.totalorder %s2868_s14, %s4246_s4 }
  0x2d   : > { %s4247_s3 = scalar_select %p3547_p8, 1, 0 }
  0x2e   : > { %p2871_p9 = pnand %p3547_p8, %p2869_p7 }
  0x30   : > { %p2872_p10 = pneg %p2871_p9 }
  0x32   : > { %p2877_p12 = pnand %p2875_p11, %p2872_p10 }
  0x34   : > { %2880 = shalt.err (!%p2877_p12)
}
  0x35   : > { %s2881_s16 = scalar_lea.vmem %s3524_s22, 512  ;;  %p2889_p4 = scmp.lt.s32.totalorder %s3524_s22, %s3524_s22 }
  0x36   : > { %p2882_p13 = scmp.ne.s32.totalorder %s3524_s22, %s2881_s16  ;;  %p2890_p5 = scmp.lt.s32.totalorder %s2881_s16, %s2881_s16 }
  0x38   : > { %p2884_p0 = pnand %p2882_p13, %p3547_p8  ;;  %p2891_p7 = por %p2890_p5, %p2889_p4 }
  0x3a   : > { %p2885_p2 = pneg %p2884_p0 }
  0x3c   : > { %p2892_p9 = pnand %p2891_p7, %p2885_p2 }
  0x3e   : > { %2895 = shalt.err (!%p2892_p9)
}
  0x3f   : > { %s4212_s20 = smov 128   ;;  %s4213_s14 = smov 8  }
  0x40   : > { %2705 = dma.hbm_to_vmem [thread:$0]  (!%p3531_p6), %s4246_s4, 512, %s3524_s22, [#allocation13], %s4212_s20, %s4212_s20, %s4213_s14  }
  0x41   : > { %s4248_s5 = sld [smem:[#allocation51_spill]] }
  0x47   : > { %s2896_s16 = scalar_lea.hbm %s4248_s5, 512 }
  0x48   : > { %p2897_p5 = scmp.ne.s32.totalorder %s4248_s5, %s2896_s16  ;;  %p2903_p12 = scmp.lt.u32.totalorder %s2896_s16, %s4248_s5 }
  0x4a   : > { %p2899_p10 = pnand %p2897_p5, %p3547_p8 }
  0x4c   : > { %p2900_p11 = pneg %p2899_p10 }
  0x4e   : > { %p2905_p13 = pnand %p2903_p12, %p2900_p11 }
  0x50   : > { %2908 = shalt.err (!%p2905_p13)
}
  0x51   : > { %s2909_s22 = scalar_lea.vmem %s3535_s25, 512  ;;  %p2917_p7 = scmp.lt.s32.totalorder %s3535_s25, %s3535_s25 }
  0x52   : > { %p2910_p0 = scmp.ne.s32.totalorder %s3535_s25, %s2909_s22  ;;  %p2918_p9 = scmp.lt.s32.totalorder %s2909_s22, %s2909_s22 }
  0x54   : > { %p2912_p2 = pnand %p2910_p0, %p3547_p8  ;;  %p2919_p5 = por %p2918_p9, %p2917_p7 }
  0x56   : > { %p2913_p4 = pneg %p2912_p2 }
  0x58   : > { %p2920_p10 = pnand %p2919_p5, %p2913_p4 }
  0x5a   : > { %2923 = shalt.err (!%p2920_p10)
}
  0x5b   : > { %2708 = dma.hbm_to_vmem [thread:$0]  (!%p3531_p6), %s4248_s5, 512, %s3535_s25, [#allocation16], %s4212_s20, %s4212_s20, %s4213_s14  }
  0x5c   : > { %s4249_s7 = sld [smem:[#allocation53_spill]] }
  0x62   : > { %s2924_s28 = scalar_lea.hbm %s4249_s7, 512 }
  0x63   : > { %p2925_p11 = scmp.ne.s32.totalorder %s4249_s7, %s2924_s28  ;;  %p2931_p0 = scmp.lt.u32.totalorder %s2924_s28, %s4249_s7 }
  0x65   : > { %p2927_p12 = pnand %p2925_p11, %p3547_p8 }
  0x67   : > { %p2928_p13 = pneg %p2927_p12 }
  0x69   : > { %p2933_p2 = pnand %p2931_p0, %p2928_p13 }
  0x6b   : > { %2936 = shalt.err (!%p2933_p2)
}
  0x6c   : > { %s2937_s22 = scalar_lea.vmem %s467_s27, 512  ;;  %p2945_p5 = scmp.lt.s32.totalorder %s467_s27, %s467_s27 }
  0x6d   : > { %p2938_p4 = scmp.ne.s32.totalorder %s467_s27, %s2937_s22  ;;  %p2946_p10 = scmp.lt.s32.totalorder %s2937_s22, %s2937_s22 }
  0x6f   : > { %p2940_p7 = pnand %p2938_p4, %p3547_p8  ;;  %p2947_p1 = por %p2946_p10, %p2945_p5 }
  0x71   : > { %p2941_p9 = pneg %p2940_p7 }
  0x73   : > { %p2948_p3 = pnand %p2947_p1, %p2941_p9 }
  0x75   : > { %2951 = shalt.err (!%p2948_p3)
}
  0x76   : > { %2714 = dma.hbm_to_vmem [thread:$0]  (!%p3531_p6), %s4249_s7, 512, %s467_s27, [#allocation19], %s4212_s20, %s4212_s20, %s4213_s14  }
  0x77   : > { %s3389_s2 = smov [#allocation21]   ;;  %s3390_s13 = smov [#allocation24]  }
  0x78   : > { %s491_s12 = sshll.u32 %s3389_s2, 4  ;;  %s513_s28 = sshll.u32 %s3390_s13, 4  ;;  %s492_s12 = int_to_ptr.vmem [resolvable:$true] %s491_s12  ;;  %s514_s28 = int_to_ptr.vmem [resolvable:$true] %s513_s28 }
  0x79   : > { %s4250_s9 = sld [smem:[#allocation54_spill]] }
  0x7f   : > { %s2952_s26 = scalar_lea.hbm %s4250_s9, 16 }
  0x80   : > { %p2953_p1 = scmp.ne.s32.totalorder %s4250_s9, %s2952_s26  ;;  %p2959_p12 = scmp.lt.u32.totalorder %s2952_s26, %s4250_s9 }
  0x82   : > { %p2955_p3 = pnand %p2953_p1, %p3547_p8 }
  0x84   : > { %p2956_p11 = pneg %p2955_p3 }
  0x86   : > { %p2961_p13 = pnand %p2959_p12, %p2956_p11 }
  0x88   : > { %2964 = shalt.err (!%p2961_p13)
}
  0x89   : > { %s2965_s27 = scalar_lea.vmem %s492_s12, 16  ;;  %s2972_s0 = scalar_lea.vmem %s492_s12, 32 }
  0x8a   : > { %p2966_p0 = scmp.ne.s32.totalorder %s492_s12, %s2965_s27  ;;  %p2973_p7 = scmp.lt.s32.totalorder %s492_s12, %s492_s12 }
  0x8b   : > { %p2974_p9 = scmp.lt.s32.totalorder %s2972_s0, %s2965_s27 }
  0x8c   : > { %p2968_p2 = pnand %p2966_p0, %p3547_p8 }
  0x8d   : > { %p2975_p5 = por %p2974_p9, %p2973_p7 }
  0x8e   : > { %p2969_p4 = pneg %p2968_p2 }
  0x90   : > { %p2976_p10 = pnand %p2975_p5, %p2969_p4 }
  0x92   : > { %2979 = shalt.err (!%p2976_p10)
}
  0x93   : > { %2720 = dma.hbm_to_vmem [thread:$0]  (!%p3531_p6), %s4250_s9, 16, %s492_s12, [#allocation22]  }
  0x94   : > { %s4251_s11 = sld [smem:[#allocation55_spill]] }
  0x9a   : > { %s2980_s24 = scalar_lea.hbm %s4251_s11, 16 }
  0x9b   : > { %p2981_p1 = scmp.ne.s32.totalorder %s4251_s11, %s2980_s24  ;;  %p2987_p12 = scmp.lt.u32.totalorder %s2980_s24, %s4251_s11 }
  0x9d   : > { %p2983_p3 = pnand %p2981_p1, %p3547_p8 }
  0x9f   : > { %p2984_p11 = pneg %p2983_p3 }
  0xa1   : > { %p2989_p13 = pnand %p2987_p12, %p2984_p11 }
  0xa3   : > { %2992 = shalt.err (!%p2989_p13)
}
  0xa4   : > { %s2993_s27 = scalar_lea.vmem %s514_s28, 16  ;;  %s3000_s12 = scalar_lea.vmem %s514_s28, 32 }
  0xa5   : > { %p2994_p0 = scmp.ne.s32.totalorder %s514_s28, %s2993_s27  ;;  %p3001_p7 = scmp.lt.s32.totalorder %s514_s28, %s514_s28 }
  0xa6   : > { %p3002_p9 = scmp.lt.s32.totalorder %s3000_s12, %s2993_s27 }
  0xa7   : > { %p2996_p2 = pnand %p2994_p0, %p3547_p8 }
  0xa8   : > { %p3003_p5 = por %p3002_p9, %p3001_p7 }
  0xa9   : > { %p2997_p4 = pneg %p2996_p2 }
  0xab   : > { %p3004_p10 = pnand %p3003_p5, %p2997_p4 }
  0xad   : > { %3007 = shalt.err (!%p3004_p10)
}
  0xae   : > { %2726 = dma.hbm_to_vmem [thread:$0]  (!%p3531_p6), %s4251_s11, 16, %s514_s28, [#allocation25]  }
  0xaf   : > { %s2437_s13 = sadd.s32 4294967294, %s3382_s18   ;;  %s60_s4 = sadd.s32 1, %s3378_s17 }
  0xb0   : > { %s69_s21 = sadd.s32 1, %s3370_s15  ;;  %p62_p1 = scmp.ge.s32.totalorder %s60_s4, 2 }
  0xb1   : > { %p76_p3 = scmp.ne.s32.totalorder %s3370_s15, %s3366_s30  ;;  %p77_p11 = scmp.eq.s32.totalorder %s3382_s18, 0 }
  0xb2   : > { %p82_p12 = scmp.ne.s32.totalorder %s3366_s30, %s3362_s29  ;;  %s4308_s4 = smov (%p62_p1, %s60_s4), 0 }
  0xb3   : > { %4252 = sst [smem:[#allocation43_spill]] %s4308_s4  ;;  %p3665_p13 = por %p77_p11, %p76_p3 }
  0xb4   : > { %p4254_p0 = scmp.eq.s32.totalorder %s3515_s19, 0  ;;  %s64_s26 = ssub.s32 %s3378_s17, %s4308_s4 }
  0xb5   : > { %p402_p4 = scmp.eq.s32.totalorder %s3515_s19, 1  ;;  %p67_p7 = scmp.eq.s32.totalorder %s64_s26, 0 }
  0xb6   : > { %p3671_p2 = por %p4254_p0, %p82_p12  ;;  %p408_p9 = scmp.eq.s32.totalorder %s2437_s13, 1 }
  0xb7   : > { %p3678_p5 = por %p402_p4, %p76_p3  ;;  %p2760_p10 = scmp.lt.s32.totalorder %s3382_s18, 2 }
  0xb8   : > { %s4255_s28 = scalar_select %p3671_p2, 1, 0 }
  0xb9   : > { %s4256_s16 = scalar_select %p3678_p5, 1, 0 }
  0xba   : > { %s3684_s22 = scalar_select %p67_p7, %s3370_s15, %s69_s21  }
  0xbb   : > { %p3686_p1 = por %p408_p9, %p82_p12  ;;  %s3691_s27 = sand.u32 1, %s3370_s15  }
  0xbc   : > { %4257 = sst [smem:[#allocation44_spill]] %s3684_s22  ;;  %s3694_s12 = sshll.u32 %s3691_s27, 3 }
  0xbd   : > { %s4258_s25 = scalar_select %p3686_p1, 1, 0 }
  0xbe   : > { %s3697_s0 = sshll.u32 %s3378_s17, 7  ;;  %p3701_p3 = pnand %p2760_p10, %p3665_p13 }
  0xbf   : > { %4259 = sst [smem:[#allocation45_spill]] %s4258_s25  ;;  %s4216_s13 = sand.u32 1, %s3382_s18  }
  0xc0   : > { %s4260_s2 = scalar_select %p3701_p3, 1, 0 }
  0xc1   : > { %s4261_s1 = sld [smem:[#allocation47_spill]]  ;;  %s569_s14 = scalar_lea.vmem [#allocation9], %s3694_s12 }
  0xc2   : > { %s577_s5 = sshll.u32 %s569_s14, 4  ;;  %s3717_s24 = scalar_lea.sflag [#allocation10], %s4216_s13  ;;  %s3713_s5 = int_to_ptr.vmem [resolvable:$true] %s577_s5 }
  0xc3   : > { %p3723_p12 = pneg %p3701_p3 }
  0xc5   : > { %s4262_s9 = scalar_select %p3723_p12, 1, 0 }
  0xc7   : > { %s3710_s20 = scalar_lea.hbm %s4261_s1, %s3697_s0  ;;  %s3013_s14 = scalar_lea.hbm %s4261_s1, 256 }
  0xc8   : > { %s3008_s7 = scalar_lea.hbm %s3710_s20, 128  ;;  %p3014_p4 = scmp.lt.u32.totalorder %s3710_s20, %s4261_s1 }
  0xc9   : > { %p3009_p11 = scmp.ne.s32.totalorder %s3710_s20, %s3008_s7  ;;  %p3015_p7 = scmp.lt.u32.totalorder %s3013_s14, %s3008_s7 }
  0xca   : > { %p3017_p10 = scmp.lt.u32.totalorder %s3008_s7, %s3710_s20 }
  0xcb   : > { %p3011_p13 = pnand %p3723_p12, %p3009_p11  ;;  %p3016_p9 = por %p3015_p7, %p3014_p4 }
  0xcd   : > { %p3012_p0 = pneg %p3011_p13  ;;  %p3018_p1 = por %p3017_p10, %p3016_p9 }
  0xcf   : > { %p3019_p5 = pnand %p3018_p1, %p3012_p0 }
  0xd1   : > { %3022 = shalt.err (!%p3019_p5)
}
  0xd2   : > { %s3023_s13 = scalar_lea.vmem %s3713_s5, 128  ;;  %s3391_s21 = smov [#allocation9]  }
  0xd3   : > { %p3024_p11 = scmp.ne.s32.totalorder %s3713_s5, %s3023_s13  ;;  %s3028_s26 = sshll.u32 %s3391_s21, 4  ;;  %s3029_s26 = int_to_ptr.vmem [resolvable:$false] %s3028_s26 }
  0xd4   : > { %s3030_s11 = scalar_lea.vmem %s3029_s26, 256  ;;  %p3031_p6 = scmp.lt.s32.totalorder %s3713_s5, %s3029_s26 }
  0xd5   : > { %p3026_p13 = pnand %p3024_p11, %p3723_p12  ;;  %p3032_p8 = scmp.lt.s32.totalorder %s3030_s11, %s3023_s13 }
  0xd7   : > { %p3027_p2 = pneg %p3026_p13  ;;  %p3033_p4 = por %p3032_p8, %p3031_p6 }
  0xd9   : > { %p3034_p7 = pnand %p3033_p4, %p3027_p2 }
  0xdb   : > { %3037 = shalt.err (!%p3034_p7)
}
  0xdc   : > { %2739 = dma.hbm_to_vmem [thread:$0]  (!%p3701_p3), %s3710_s20, 128, %s3713_s5, %s3717_s24  }
  0xdd   : > { %s3392_s7 = smov [#allocation17]   ;;  %s3393_s14 = smov [#allocation20]  }
  0xde   : > { %s453_s4 = sshll.u32 %s3392_s7, 4  ;;  %s480_s1 = sshll.u32 %s3393_s14, 4  ;;  %s454_s4 = int_to_ptr.vmem [resolvable:$true] %s453_s4  ;;  %s481_s1 = int_to_ptr.vmem [resolvable:$true] %s480_s1 }
  0xdf   : > { %s4263_s6 = sld [smem:[#allocation52_spill]]  ;;  %p4264_p8 = scmp.ne.s32.totalorder %s4247_s3, 0 }
  0xe5   : > { %s3038_s26 = scalar_lea.hbm %s4263_s6, 512 }
  0xe6   : > { %p3039_p6 = scmp.ne.s32.totalorder %s4263_s6, %s3038_s26  ;;  %p3045_p1 = scmp.lt.u32.totalorder %s3038_s26, %s4263_s6 }
  0xe8   : > { %p3041_p2 = pnand %p3039_p6, %p4264_p8 }
  0xea   : > { %p3042_p5 = pneg %p3041_p2 }
  0xec   : > { %p3047_p0 = pnand %p3045_p1, %p3042_p5 }
  0xee   : > { %3050 = shalt.err (!%p3047_p0)
}
  0xef   : > { %s3051_s5 = scalar_lea.vmem %s454_s4, 512  ;;  %p3059_p13 = scmp.lt.s32.totalorder %s454_s4, %s454_s4 }
  0xf0   : > { %p3052_p9 = scmp.ne.s32.totalorder %s454_s4, %s3051_s5  ;;  %p3060_p4 = scmp.lt.s32.totalorder %s3051_s5, %s3051_s5 }
  0xf2   : > { %p3054_p10 = pnand %p3052_p9, %p4264_p8  ;;  %p3061_p7 = por %p3060_p4, %p3059_p13 }
  0xf4   : > { %p3055_p11 = pneg %p3054_p10 }
  0xf6   : > { %p3062_p3 = pnand %p3061_p7, %p3055_p11 }
  0xf8   : > { %3065 = shalt.err (!%p3062_p3)
}
  0xf9   : > { %p4265_p6 = scmp.ne.s32.totalorder %s4245_s23, 0  ;;  %s4266_s20 = smov 8  }
  0xfa   : > { %s4267_s22 = smov 128   ;;  %s3066_s21 = scalar_lea.hbm %s4196_s8, 16 }
  0xfb   : > { %2711 = dma.hbm_to_vmem [thread:$0]  (!%p4265_p6), %s4263_s6, 512, %s454_s4, [#allocation16], %s4267_s22, %s4267_s22, %s4266_s20  }
  0xfc   : > { %p3067_p2 = scmp.ne.s32.totalorder %s4196_s8, %s3066_s21  ;;  %p3073_p1 = scmp.lt.u32.totalorder %s3066_s21, %s4196_s8 }
  0xfe   : > { %p3069_p3 = pnand %p3067_p2, %p4264_p8 }
 0x100   : > { %p3070_p5 = pneg %p3069_p3 }
 0x102   : > { %p3075_p0 = pnand %p3073_p1, %p3070_p5 }
 0x104   : > { %3078 = shalt.err (!%p3075_p0)
}
 0x105   : > { %s3079_s15 = scalar_lea.vmem %s481_s1, 16  ;;  %s3086_s4 = scalar_lea.vmem %s481_s1, 32 }
 0x106   : > { %p3080_p9 = scmp.ne.s32.totalorder %s481_s1, %s3079_s15  ;;  %p3087_p13 = scmp.lt.s32.totalorder %s481_s1, %s481_s1 }
 0x107   : > { %p3088_p4 = scmp.lt.s32.totalorder %s3086_s4, %s3079_s15 }
 0x108   : > { %p3082_p10 = pnand %p3080_p9, %p4264_p8 }
 0x109   : > { %p3089_p7 = por %p3088_p4, %p3087_p13 }
 0x10a   : > { %p3083_p11 = pneg %p3082_p10 }
 0x10c   : > { %p3090_p12 = pnand %p3089_p7, %p3083_p11 }
 0x10e   : > { %3093 = shalt.err (!%p3090_p12)
}
 0x10f   : > { %2717 = dma.hbm_to_vmem [thread:$0]  (!%p4265_p6), %s4196_s8, 16, %s481_s1, [#allocation19]  }
 0x110   : > { %s3394_s25 = smov [#allocation23]   ;;  %s3395_s14 = smov [#allocation26]  }
 0x111   : > { %s502_s7 = sshll.u32 %s3394_s25, 4  ;;  %s524_s21 = sshll.u32 %s3395_s14, 4  ;;  %s503_s7 = int_to_ptr.vmem [resolvable:$true] %s502_s7  ;;  %s525_s21 = int_to_ptr.vmem [resolvable:$true] %s524_s21 }
 0x112   : > { %s3094_s11 = scalar_lea.hbm %s4198_s10, 16 }
 0x113   : > { %p3095_p12 = scmp.ne.s32.totalorder %s4198_s10, %s3094_s11  ;;  %p3101_p5 = scmp.lt.u32.totalorder %s3094_s11, %s4198_s10 }
 0x115   : > { %p3097_p2 = pnand %p3095_p12, %p4264_p8 }
 0x117   : > { %p3098_p3 = pneg %p3097_p2 }
 0x119   : > { %p3103_p1 = pnand %p3101_p5, %p3098_p3 }
 0x11b   : > { %3106 = shalt.err (!%p3103_p1)
}
 0x11c   : > { %s3107_s1 = scalar_lea.vmem %s503_s7, 16  ;;  %s3114_s22 = scalar_lea.vmem %s503_s7, 32 }
 0x11d   : > { %p3108_p0 = scmp.ne.s32.totalorder %s503_s7, %s3107_s1  ;;  %p3115_p11 = scmp.lt.s32.totalorder %s503_s7, %s503_s7 }
 0x11e   : > { %p3116_p13 = scmp.lt.s32.totalorder %s3114_s22, %s3107_s1 }
 0x11f   : > { %p3110_p9 = pnand %p3108_p0, %p4264_p8 }
 0x120   : > { %p3117_p4 = por %p3116_p13, %p3115_p11 }
 0x121   : > { %p3111_p10 = pneg %p3110_p9 }
 0x123   : > { %p3118_p7 = pnand %p3117_p4, %p3111_p10 }
 0x125   : > { %3121 = shalt.err (!%p3118_p7)
}
 0x126   : > { %2723 = dma.hbm_to_vmem [thread:$0]  (!%p4265_p6), %s4198_s10, 16, %s503_s7, [#allocation22]  }
 0x127   : > { %s4268_s11 = sld [smem:[#allocation56_spill]] }
 0x12d   : > { %s3122_s5 = scalar_lea.hbm %s4268_s11, 16 }
 0x12e   : > { %p3123_p12 = scmp.ne.s32.totalorder %s4268_s11, %s3122_s5  ;;  %p3129_p5 = scmp.lt.u32.totalorder %s3122_s5, %s4268_s11 }
 0x130   : > { %p3125_p2 = pnand %p3123_p12, %p4264_p8 }
 0x132   : > { %p3126_p3 = pneg %p3125_p2 }
 0x134   : > { %p3131_p1 = pnand %p3129_p5, %p3126_p3 }
 0x136   : > { %3134 = shalt.err (!%p3131_p1)
}
 0x137   : > { %s3135_s22 = scalar_lea.vmem %s525_s21, 16  ;;  %s3142_s7 = scalar_lea.vmem %s525_s21, 32 }
 0x138   : > { %p3136_p0 = scmp.ne.s32.totalorder %s525_s21, %s3135_s22  ;;  %p3143_p11 = scmp.lt.s32.totalorder %s525_s21, %s525_s21 }
 0x139   : > { %p3144_p13 = scmp.lt.s32.totalorder %s3142_s7, %s3135_s22 }
 0x13a   : > { %p3138_p9 = pnand %p3136_p0, %p4264_p8 }
 0x13b   : > { %p3145_p4 = por %p3144_p13, %p3143_p11 }
 0x13c   : > { %p3139_p10 = pneg %p3138_p9 }
 0x13e   : > { %p3146_p7 = pnand %p3145_p4, %p3139_p10 }
 0x140   : > { %3149 = shalt.err (!%p3146_p7)
}
 0x141   : > { %2729 = dma.hbm_to_vmem [thread:$0]  (!%p4265_p6), %s4268_s11, 16, %s525_s21, [#allocation25]  }
 0x142   : > { %s3396_s26 = smov [#allocation27]   ;;  %s4269_s4 = sld [smem:[#allocation57_spill]] }
 0x143   : > { %s535_s13 = sshll.u32 %s3396_s26, 4  ;;  %s536_s13 = int_to_ptr.vmem [resolvable:$true] %s535_s13 }
 0x148   : > { %s3150_s20 = scalar_lea.hbm %s4269_s4, 16 }
 0x149   : > { %p3151_p12 = scmp.ne.s32.totalorder %s4269_s4, %s3150_s20  ;;  %p3157_p5 = scmp.lt.u32.totalorder %s3150_s20, %s4269_s4 }
 0x14b   : > { %p3153_p2 = pnand %p3151_p12, %p4264_p8 }
 0x14d   : > { %p3154_p3 = pneg %p3153_p2 }
 0x14f   : > { %p3159_p1 = pnand %p3157_p5, %p3154_p3 }
 0x151   : > { %3162 = shalt.err (!%p3159_p1)
}
 0x152   : > { %s3163_s21 = scalar_lea.vmem %s536_s13, 16  ;;  %s3170_s25 = scalar_lea.vmem %s536_s13, 32 }
 0x153   : > { %p3164_p0 = scmp.ne.s32.totalorder %s536_s13, %s3163_s21  ;;  %p3171_p11 = scmp.lt.s32.totalorder %s536_s13, %s536_s13 }
 0x154   : > { %p3172_p13 = scmp.lt.s32.totalorder %s3170_s25, %s3163_s21 }
 0x155   : > { %p3166_p9 = pnand %p3164_p0, %p4264_p8 }
 0x156   : > { %p3173_p4 = por %p3172_p13, %p3171_p11 }
 0x157   : > { %p3167_p10 = pneg %p3166_p9 }
 0x159   : > { %p3174_p7 = pnand %p3173_p4, %p3167_p10 }
 0x15b   : > { %3177 = shalt.err (!%p3174_p7)
}
 0x15c   : > { %2732 = dma.hbm_to_vmem [thread:$0]  (!%p4265_p6), %s4269_s4, 16, %s536_s13, [#allocation28]  }
 0x15d   : > { %s4270_s5 = sld [smem:[#allocation46_spill]]  ;;  %s550_s20 = scalar_lea.vmem [#allocation6], %s3694_s12 }
 0x15e   : > { %s558_s1 = sshll.u32 %s550_s20, 4  ;;  %s547_s23 = scalar_lea.sflag [#allocation7], %s3691_s27  ;;  %s559_s1 = int_to_ptr.vmem [resolvable:$true] %s558_s1 }
 0x15f   : > { %p4271_p12 = scmp.ne.s32.totalorder %s4262_s9, 0 }
 0x163   : > { %s3844_s15 = scalar_lea.hbm %s4270_s5, %s3697_s0  ;;  %s3183_s21 = scalar_lea.hbm %s4270_s5, 256 }
 0x164   : > { %s3178_s22 = scalar_lea.hbm %s3844_s15, 128  ;;  %p3184_p6 = scmp.lt.u32.totalorder %s3844_s15, %s4270_s5 }
 0x165   : > { %p3179_p8 = scmp.ne.s32.totalorder %s3844_s15, %s3178_s22  ;;  %p3185_p5 = scmp.lt.u32.totalorder %s3183_s21, %s3178_s22 }
 0x166   : > { %p3187_p0 = scmp.lt.u32.totalorder %s3178_s22, %s3844_s15 }
 0x167   : > { %p3181_p2 = pnand %p3179_p8, %p4271_p12  ;;  %p3186_p1 = por %p3185_p5, %p3184_p6 }
 0x169   : > { %p3182_p3 = pneg %p3181_p2  ;;  %p3188_p9 = por %p3187_p0, %p3186_p1 }
 0x16b   : > { %p3189_p10 = pnand %p3188_p9, %p3182_p3 }
 0x16d   : > { %3192 = shalt.err (!%p3189_p10)
}
 0x16e   : > { %s3193_s14 = scalar_lea.vmem %s559_s1, 128  ;;  %s3397_s26 = smov [#allocation6]  }
 0x16f   : > { %p3194_p11 = scmp.ne.s32.totalorder %s559_s1, %s3193_s14  ;;  %s3198_s3 = sshll.u32 %s3397_s26, 4  ;;  %s3199_s3 = int_to_ptr.vmem [resolvable:$false] %s3198_s3 }
 0x170   : > { %s3200_s20 = scalar_lea.vmem %s3199_s3, 256  ;;  %p3201_p7 = scmp.lt.s32.totalorder %s559_s1, %s3199_s3 }
 0x171   : > { %p3196_p13 = pnand %p3194_p11, %p4271_p12  ;;  %p3202_p8 = scmp.lt.s32.totalorder %s3200_s20, %s3193_s14 }
 0x173   : > { %p3197_p4 = pneg %p3196_p13  ;;  %p3203_p2 = por %p3202_p8, %p3201_p7 }
 0x175   : > { %p3204_p5 = pnand %p3203_p2, %p3197_p4 }
 0x177   : > { %3207 = shalt.err (!%p3204_p5)
}
 0x178   : > { %p4272_p6 = scmp.ne.s32.totalorder %s4260_s2, 0  ;;  %s4273_s13 = sld [smem:[#allocation48_spill]] }
 0x179   : > { %s588_s25 = scalar_lea.vmem [#allocation11], %s3694_s12 }
 0x17a   : > { %2736 = dma.hbm_to_vmem [thread:$0]  (!%p4272_p6), %s3844_s15, 128, %s559_s1, %s547_s23  }
 0x17b   : > { %s596_s6 = sshll.u32 %s588_s25, 4  ;;  %s597_s6 = int_to_ptr.vmem [resolvable:$true] %s596_s6 }
 0x17e   : > { %s3869_s21 = scalar_lea.hbm %s4273_s13, %s3697_s0  ;;  %s3213_s15 = scalar_lea.hbm %s4273_s13, 256 }
 0x17f   : > { %s3208_s14 = scalar_lea.hbm %s3869_s21, 128  ;;  %p3214_p9 = scmp.lt.u32.totalorder %s3869_s21, %s4273_s13 }
 0x180   : > { %p3209_p3 = scmp.ne.s32.totalorder %s3869_s21, %s3208_s14  ;;  %p3215_p10 = scmp.lt.u32.totalorder %s3213_s15, %s3208_s14 }
 0x181   : > { %p3217_p13 = scmp.lt.u32.totalorder %s3208_s14, %s3869_s21 }
 0x182   : > { %p3211_p1 = pnand %p3209_p3, %p4271_p12  ;;  %p3216_p11 = por %p3215_p10, %p3214_p9 }
 0x184   : > { %p3212_p0 = pneg %p3211_p1  ;;  %p3218_p4 = por %p3217_p13, %p3216_p11 }
 0x186   : > { %p3219_p7 = pnand %p3218_p4, %p3212_p0 }
 0x188   : > { %3222 = shalt.err (!%p3219_p7)
}
 0x189   : > { %s3223_s12 = scalar_lea.vmem %s597_s6, 128  ;;  %s3398_s0 = smov [#allocation11]  }
 0x18a   : > { %p3224_p8 = scmp.ne.s32.totalorder %s597_s6, %s3223_s12  ;;  %s3228_s20 = sshll.u32 %s3398_s0, 4  ;;  %s3229_s20 = int_to_ptr.vmem [resolvable:$false] %s3228_s20 }
 0x18b   : > { %s3230_s22 = scalar_lea.vmem %s3229_s20, 256  ;;  %p3231_p3 = scmp.lt.s32.totalorder %s597_s6, %s3229_s20 }
 0x18c   : > { %p3226_p2 = pnand %p3224_p8, %p4271_p12  ;;  %p3232_p1 = scmp.lt.s32.totalorder %s3230_s22, %s3223_s12 }
 0x18e   : > { %p3227_p5 = pneg %p3226_p2  ;;  %p3233_p6 = por %p3232_p1, %p3231_p3 }
 0x190   : > { %p3234_p9 = pnand %p3233_p6, %p3227_p5 }
 0x192   : > { %3237 = shalt.err (!%p3234_p9)
}
 0x193   : > { %p4274_p10 = scmp.ne.s32.totalorder %s4260_s2, 0  ;;  %s2456_s7 = sshll.u32 %s3378_s17, 4 }
 0x194   : > { %s606_s25 = scalar_lea.vmem [#allocation12], %s3691_s27  ;;  %s4275_s15 = sld [smem:[#allocation49_spill]] }
 0x195   : > { %2742 = dma.hbm_to_vmem [thread:$0]  (!%p4274_p10), %s3869_s21, 128, %s597_s6, %s3717_s24  }
 0x196   : > { %s614_s14 = sshll.u32 %s606_s25, 4  ;;  %s4277_s12 = sand.u32 1, %s3382_s18   ;;  %s615_s14 = int_to_ptr.vmem [resolvable:$true] %s614_s14 }
 0x197   : > { %s604_s0 = scalar_lea.sflag [#allocation13], %s4277_s12 }
 0x19a   : > { %s4276_s1 = smov %s4275_s15  ;;  %s3895_s23 = scalar_lea.hbm %s4275_s15, %s2456_s7 }
 0x19b   : > { %s3238_s20 = scalar_lea.hbm %s3895_s23, 16  ;;  %s3243_s21 = scalar_lea.hbm %s4276_s1, 32 }
 0x19c   : > { %p3239_p6 = scmp.ne.s32.totalorder %s3895_s23, %s3238_s20  ;;  %p3244_p13 = scmp.lt.u32.totalorder %s3895_s23, %s4276_s1 }
 0x19d   : > { %p3245_p4 = scmp.lt.u32.totalorder %s3243_s21, %s3238_s20  ;;  %p3247_p8 = scmp.lt.u32.totalorder %s3238_s20, %s3895_s23 }
 0x19e   : > { %p3241_p0 = pnand %p3239_p6, %p4271_p12 }
 0x19f   : > { %p3246_p7 = por %p3245_p4, %p3244_p13 }
 0x1a0   : > { %p3242_p11 = pneg %p3241_p0 }
 0x1a1   : > { %p3248_p2 = por %p3247_p8, %p3246_p7 }
 0x1a3   : > { %p3249_p5 = pnand %p3248_p2, %p3242_p11 }
 0x1a5   : > { %3252 = shalt.err (!%p3249_p5)
}
 0x1a6   : > { %s3253_s7 = scalar_lea.vmem %s615_s14, 16  ;;  %s3399_s25 = smov [#allocation12]  }
 0x1a7   : > { %p3254_p3 = scmp.ne.s32.totalorder %s615_s14, %s3253_s7  ;;  %s3258_s26 = sshll.u32 %s3399_s25, 4  ;;  %s3259_s26 = int_to_ptr.vmem [resolvable:$false] %s3258_s26 }
 0x1a8   : > { %s3260_s3 = scalar_lea.vmem %s3259_s26, 32  ;;  %p3261_p6 = scmp.lt.s32.totalorder %s615_s14, %s3259_s26 }
 0x1a9   : > { %p3256_p1 = pnand %p3254_p3, %p4271_p12  ;;  %p3262_p0 = scmp.lt.s32.totalorder %s3260_s3, %s3253_s7 }
 0x1ab   : > { %p3257_p9 = pneg %p3256_p1  ;;  %p3263_p10 = por %p3262_p0, %p3261_p6 }
 0x1ad   : > { %p3264_p4 = pnand %p3263_p10, %p3257_p9 }
 0x1af   : > { %3267 = shalt.err (!%p3264_p4)
}
 0x1b0   : > { %p4278_p13 = scmp.ne.s32.totalorder %s4260_s2, 0  ;;  %s4279_s15 = sld [smem:[#allocation42_spill]] }
 0x1b2   : > { %2745 = dma.hbm_to_vmem [thread:$0]  (!%p4278_p13), %s3895_s23, 16, %s615_s14, %s604_s0  }
 0x1b6   : > { %p4280_p11 = scmp.ne.s32.totalorder %s4279_s15, 0 }
 0x1b7   : > { %s3919_s9 = sand.u32 (!%p4280_p11), 1, %s3366_s30   ;;  %p4281_p12 = scmp.ne.s32.totalorder (!%p4280_p11), %s4255_s28, 0 }
 0x1b8   : > { %623 = sbr.rel (%p4280_p11) target bundleno = 2172 (0x87c), region = 76  ;;  %s3922_s12 = sshll.u32 (!%p4280_p11), %s3919_s9, 3 }
 0x1b9   : > { %s626_s20 = scalar_lea.sflag (!%p4280_p11), [#allocation7], %s3919_s9  ;;  %s629_s24 = scalar_lea.vmem (!%p4280_p11), [#allocation6], %s3922_s12 }
 0x1bf   : > { %3321 = dma.done.wait (%p4281_p12), %s626_s20, 128  }
 0x1c0   : > { %3323 = vsyncadd (%p4281_p12), %s626_s20, 4294967168  ;;  %s634_s2 = sand.u32 1, %s3515_s19   ;;  %s638_s23 = scalar_lea.vmem [#allocation9], %s3922_s12 }
 0x1c1   : > { %s635_s14 = scalar_lea.sflag [#allocation10], %s634_s2 }
 0x1c2   : > { %3325 = dma.done.wait (%p4281_p12), %s635_s14, 256  }
 0x1c3   : > { %3327 = vsyncadd (%p4281_p12), %s635_s14, 4294967040  ;;  %s647_s0 = scalar_lea.vmem [#allocation11], %s3922_s12  ;;  %s653_s27 = scalar_lea.sflag [#allocation13], %s634_s2 }
 0x1c4   : > { %s655_s21 = scalar_lea.vmem [#allocation12], %s3919_s9 }
 0x1c5   : > { %3329 = dma.done.wait (%p4281_p12), %s653_s27, 16  }
 0x1c6   : > { %3331 = vsyncadd (%p4281_p12), %s653_s27, 4294967280  ;;  %p4282_p10 = scmp.eq.s32.totalorder %s3515_s19, 0 }
 0x1c8   : > { %3333 = dma.done.wait (%p4282_p10), [#allocation13], 512   ;;  %p4283_p7 = pmov %p4282_p10 }
 0x1ca   : > { %3335 = vsyncadd (%p4283_p7), [#allocation13], 4294966784  ;;  %p4284_p8 = pmov %p4283_p7 }
 0x1cb   : > { %p4285_p2 = pmov %p4283_p7 }
 0x1cc   : > { %3337 = dma.done.wait (%p4284_p8), [#allocation16], 1024  }
 0x1cd   : > { %3339 = vsyncadd (%p4285_p2), [#allocation16], 4294966272  ;;  %p4286_p5 = pmov %p4285_p2 }
 0x1ce   : > { %p4287_p3 = pmov %p4285_p2 }
 0x1cf   : > { %3341 = dma.done.wait (%p4286_p5), [#allocation19], 528  }
 0x1d0   : > { %3343 = vsyncadd (%p4287_p3), [#allocation19], 4294966768  ;;  %p4288_p1 = pmov %p4285_p2 }
 0x1d2   : > { %3345 = dma.done.wait (%p4288_p1), [#allocation22], 32   ;;  %p4289_p9 = pmov %p4288_p1 }
 0x1d3   : > { %p4290_p6 = pmov %p4288_p1 }
 0x1d4   : > { %3347 = vsyncadd (%p4289_p9), [#allocation22], 4294967264 }
 0x1d5   : > { %3349 = dma.done.wait (%p4290_p6), [#allocation25], 32   ;;  %p4291_p0 = pmov %p4288_p1 }
 0x1d7   : > { %3351 = vsyncadd (%p4291_p0), [#allocation25], 4294967264  ;;  %p4292_p4 = pmov %p4291_p0 }
 0x1d8   : > { %p4293_p13 = pmov %p4291_p0 }
 0x1d9   : > { %3353 = dma.done.wait (%p4292_p4), [#allocation28], 16  }
 0x1da   : > { %3355 = vsyncadd (%p4293_p13), [#allocation28], 4294967280  ;;  %v3400_v0 = vmov 0.0|0.0   ;;  %vm3401_vm0 = vmmov 0   ;;  %v3402_v1 = vmov 0.0   ;;  %v759_v2 = vld [vmem:[#allocation14] sm:$0xff] }
 0x1db   : > { %2634 = vmatprep.subr.bf16.mxu0 %v3400_v0  ;;  %2640 = vmatprep.subr.bf16.mxu1 %v3400_v0  ;;  %v760_v3 = vld [vmem:[#allocation14 + $0x8] sm:$0xff]  ;;  %v860_v4 = vld [vmem:[#allocation15] sm:$0xff]  ;;  %v761_v7 = vld [vmem:[#allocation14 + $0x10] sm:$0xff]  ;;  %vm770_vm1 = vcmask 261120   ;;  %vm854_vm2 = vcmask 64512   ;;  %s3403_s19 = smov 112  }
 0x1dc   : > { %2549 = vmatprep.mubr.msk.f32.mxu0 %vm3401_vm0, %v3402_v1  ;;  %2560 = vmatprep.mubr.msk.f32.mxu1 %vm3401_vm0, %v3402_v1  ;;  %v2635_v5 = vpack.c.bf16 %v760_v3, %v759_v2  ;;  %v861_v6 = vld [vmem:[#allocation15 + $0x8] sm:$0xff]  ;;  %v762_v8 = vld [vmem:[#allocation14 + $0x18] sm:$0xff]  ;;  %v862_v10 = vld [vmem:[#allocation15 + $0x10] sm:$0xff]  ;;  %855 = vst.msk [vmem:[#allocation5] sm:$0xff] %vm854_vm2, %v3402_v1  ;;  %s3404_s28 = smov 120   ;;  %s3405_s6 = smov 104  }
 0x1dd   : > { %v2641_v9 = vpack.c.bf16 %v861_v6, %v860_v4  ;;  %v863_v11 = vld [vmem:[#allocation15 + $0x18] sm:$0xff]  ;;  %v2638_v12 = vpack.c.bf16 %v762_v8, %v761_v7  ;;  %856 = vst.msk [vmem:[#allocation5 + $0x8] sm:$0xff] %vm854_vm2, %v3402_v1  ;;  %857 = vst.msk [vmem:[#allocation5 + $0x10] sm:$0xff] %vm854_vm2, %v3402_v1  ;;  %v946_v16 = vld [vmem:[#allocation17] sm:$0xff]  ;;  %vm845_vm3 = vcmask 7168   ;;  %v3406_v43 = vmov -inf  }
 0x1de   : > { %2636 = vmatpush3.bf16.msra.mxu0 %v2635_v5  ;;  %v2644_v13 = vpack.c.bf16 %v863_v11, %v862_v10  ;;  %v3972_v14 = vld [vmem:[%s629_s24] sm:$0xff]  ;;  %v859_v15 = vld [vmem:[%s638_s23] sm:$0xff]  ;;  %858 = vst.msk [vmem:[#allocation5 + $0x18] sm:$0xff] %vm854_vm2, %v3402_v1  ;;  %v3407_v48 = vmov 0   ;;  %s4294_s22 = sld [smem:[#allocation41_spill]]  ;;  %s753_s25 = scalar_lea.vmem [#allocation29], %s3922_s12 }
 0x1df   : > { %2637 = vmatprep.subr.bf16.mxu0 %v3400_v0  ;;  %2642 = vmatpush3.bf16.msra.mxu1 %v2641_v9  ;;  %v947_v17 = vld [vmem:[#allocation17 + $0x8] sm:$0xff]  ;;  %v948_v18 = vld [vmem:[#allocation17 + $0x10] sm:$0xff]  ;;  %v949_v20 = vld [vmem:[#allocation17 + $0x18] sm:$0xff]  ;;  %846 = vst.msk [vmem:[#allocation3] sm:$0xff] %vm845_vm3, %v3406_v43  ;;  %s2192_s26 = sshll.u32 %s753_s25, 4  ;;  %s4295_s20 = sld [smem:[#allocation58_spill]]  ;;  %s4140_s26 = int_to_ptr.vmem [resolvable:$true] %s2192_s26 }
 0x1e0   : > { %2643 = vmatprep.subr.bf16.mxu1 %v3400_v0  ;;  %v2647_v19 = vpack.c.bf16 %v947_v17, %v946_v16  ;;  %v2650_v21 = vpack.c.bf16 %v949_v20, %v948_v18  ;;  %v945_v22 = vld [vmem:[%s647_s0] sm:$0xff]  ;;  %v2472_v23 = vld [vmem:[#allocation20] ss:$0 sm:$0xff]  ;;  %v2474_v24 = vld [vmem:[#allocation21] ss:$0 sm:$0xff]  ;;  %847 = vst.msk [vmem:[#allocation3 + $0x8] sm:$0xff] %vm845_vm3, %v3406_v43  ;;  %2840 = vset.pattern.permute.xlu1 %v3407_v48 }
 0x1e1   : > { %v2476_v38 = vld [vmem:[#allocation23] ss:$0 sm:$0xff]  ;;  %v2478_v42 = vld [vmem:[%s655_s21] ss:$0 sm:$0xff]  ;;  %848 = vst.msk [vmem:[#allocation3 + $0x10] sm:$0xff] %vm845_vm3, %v3406_v43  ;;  %849 = vst.msk [vmem:[#allocation3 + $0x18] sm:$0xff] %vm845_vm3, %v3406_v43  ;;  %2841 = vset.pattern.permute.xlu0 %v3407_v48 }
 0x1e2   : > { %2639 = vmatpush3.bf16.msra.mxu0 %v2638_v12  ;;  %850 = vst.msk [vmem:[#allocation4] sm:$0xff] %vm845_vm3, %v3402_v1  ;;  %851 = vst.msk [vmem:[#allocation4 + $0x8] sm:$0xff] %vm845_vm3, %v3402_v1  ;;  %s2178_s2 = scalar_lea.sflag [#allocation8], %s3919_s9  ;;  %s3268_s14 = scalar_lea.vmem %s4140_s26, 128 }
 0x1e3   : > { %2645 = vmatpush3.bf16.msra.mxu1 %v2644_v13  ;;  %2646 = vmatprep.subr.bf16.mxu0 %v3400_v0  ;;  %852 = vst.msk [vmem:[#allocation4 + $0x10] sm:$0xff] %vm845_vm3, %v3402_v1  ;;  %853 = vst.msk [vmem:[#allocation4 + $0x18] sm:$0xff] %vm845_vm3, %v3402_v1  ;;  %p3269_p11 = scmp.ne.s32.totalorder %s4140_s26, %s3268_s14  ;;  %p4296_p12 = scmp.ne.s32.totalorder %s4256_s16, 0 }
 0x1e4   : > { %2574 = vmatprep.subr.mxu1 %v3402_v1  ;;  %s2499_s7 = sshll.u32 %s4294_s22, 7  ;;  %s3408_s12 = smov [#allocation29]  }
 0x1e5   : > { %2550 = vmatmul.mubr.msk.f32.vlgmr.msra.gmra.mrb[0].mxu0 %vm770_vm1, %v3972_v14  ;;  %s4138_s24 = scalar_lea.hbm %s4295_s20, %s2499_s7  ;;  %p3270_p10 = pnand %p3269_p11, %p4296_p12 }
 0x1e6   : > { %2561 = vmatmul.mubr.msk.f32.vlgmr.msra.gmra.mrb[0].mxu1 %vm770_vm1, %v859_v15  ;;  %2571 = vmatprep.mubr.msk.f32.mxu0 %vm3401_vm0, %v3402_v1  ;;  %v4047_v61 = vld [vmem:[#allocation3] sm:$0xff]  ;;  %s3272_s23 = sshll.u32 %s3408_s12, 4  ;;  %s3273_s23 = int_to_ptr.vmem [resolvable:$false] %s3272_s23 }
 0x1e7   : > { %2576 = vmatprep.mubr.msk.f32.mxu1 %vm3401_vm0, %v3402_v1  ;;  %2648 = vmatpush3.bf16.msra.mxu0 %v2647_v19  ;;  %v1303_v2 = vld [vmem:[#allocation3 + $0x8] sm:$0xff]  ;;  %p3271_p7 = pneg %p3270_p10  ;;  %s3274_s0 = scalar_lea.vmem %s3273_s23, 256 }
 0x1e8   : > { %2649 = vmatprep.subr.bf16.mxu0 %v3400_v0  ;;  %v4057_v5 = vld [vmem:[#allocation3 + $0x10] sm:$0xff]  ;;  %v4063_v8 = vld [vmem:[#allocation3 + $0x18] sm:$0xff]  ;;  %p3275_p8 = scmp.lt.s32.totalorder %s4140_s26, %s3273_s23  ;;  %p3276_p2 = scmp.lt.s32.totalorder %s3274_s0, %s3268_s14 }
 0x1ea   : > { %p3277_p5 = por %p3276_p2, %p3275_p8 }
 0x1eb   : > { %2651 = vmatpush3.bf16.msra.mxu0 %v2650_v21 }
 0x1ec   : > { %2584 = vmatprep.subr.mxu0 %v3402_v1  ;;  %p3278_p3 = pnand %p3277_p5, %p3271_p7 }
 0x1ee   : > { %2572 = vmatmul.mubr.msk.f32.vlgmr.msra.gmra.mrb[2].mxu0 %vm770_vm1, %v945_v22 }
 0x1ef   : > { %2586 = vmatprep.mubr.msk.f32.mxu0 %vm3401_vm0, %v3402_v1 }
 0x2b8   : > { %v840_v25 = vpop.f32.mrb[0].mxu0 }
 0x2b9   : > { %v841_v26 = vadd.f32 %v2472_v23, %v840_v25  ;;  %v2551_v27 = vpop.f32.mrb[1].mxu0  ;;  %v941_v28 = vpop.f32.mrb[0].mxu1 }
 0x2ba   : > { %v942_v29 = vadd.f32 %v2474_v24, %v941_v28  ;;  %v2562_v30 = vpop.f32.mrb[1].mxu1 }
 0x2bb   : > { %844 = vst.msk [vmem:[#allocation2] sm:$0xff] %vm770_vm1, %v841_v26 }
 0x2bc   : > { %1419 = vrot.lane.b32.xlu1 %v942_v29, %s3403_s19  ;;  %1226 = vrot.lane.b32.xlu0 %v942_v29, %s3404_s28 }
 0x2bd   : > { %2575 = vmatpush3.xpose.msk.msra.mxu1 %vm854_vm2, %v942_v29 }
 0x2be   : > { %2579 = vmatprep.subr.mxu1 %v3402_v1 }
 0x2c1   : > { %v1026_v39 = vpop.f32.mrb[2].mxu0 }
 0x2c2   : > { %v1415_v31 = vld [vmem:[#allocation2] sm:$0xff]  ;;  %v4025_v40 = vadd.f32 %v2476_v38, %v1026_v39  ;;  %v2573_v41 = vpop.f32.mrb[3].mxu0 }
 0x2c3   : > { %1417 = vrot.lane.b32.xlu1 %v1415_v31, %s3403_s19  ;;  %1224 = vrot.lane.b32.xlu0 %v1415_v31, %s3404_s28 }
 0x2c4   : > { %2577 = vmatmul.mubr.msk.f32.vlgmr.msra.gmra.mrb[2].mxu1 %vm854_vm2, %v1415_v31 }
 0x2c5   : > { %2581 = vmatprep.mubr.msk.f32.mxu1 %vm3401_vm0, %v3402_v1  ;;  %2580 = vmatpush3.msra.mxu1 %v4025_v40 }
 0x2c6   : > { %2589 = vmatprep.subr.mxu1 %v3402_v1 }
 0x2c7   : > { %1609 = vrot.lane.b32.xlu1 %v1415_v31, %s3405_s6  ;;  %1611 = vrot.lane.b32.xlu0 %v942_v29, %s3405_s6 }
 0x32e   : > { %v1227_v32 = vpop.permute.xlu0 %1226  ;;  %v1420_v33 = vpop.permute.xlu1 %1419 }
 0x32f   : > { %2585 = vmatpush3.xpose.msk.msra.mxu0 %vm854_vm2, %v1227_v32 }
 0x330   : > { %2594 = vmatprep.subr.mxu0 %v3402_v1 }
 0x335   : > { %v1225_v34 = vpop.permute.xlu0 %1224  ;;  %v1418_v35 = vpop.permute.xlu1 %1417 }
 0x336   : > { %2587 = vmatmul.mubr.msk.f32.vlgmr.msra.gmra.mrb[4].mxu0 %vm854_vm2, %v1225_v34 }
 0x337   : > { %2595 = vmatpush3.xpose.msk.msra.mxu0 %vm854_vm2, %v1420_v33  ;;  %2596 = vmatprep.mubr.msk.f32.mxu0 %vm3401_vm0, %v3402_v1 }
 0x338   : > { %2604 = vmatprep.subr.mxu0 %v3402_v1 }
 0x339   : > { %v1612_v36 = vpop.permute.xlu0 %1611  ;;  %v1610_v37 = vpop.permute.xlu1 %1609 }
 0x33a   : > { %2597 = vmatmul.mubr.msk.f32.vlgmr.msra.gmra.mrb[6].mxu0 %vm854_vm2, %v1418_v35 }
 0x33b   : > { %2605 = vmatpush3.xpose.msk.msra.mxu0 %vm854_vm2, %v1612_v36  ;;  %2606 = vmatprep.mubr.msk.f32.mxu0 %vm3401_vm0, %v3402_v1 }
 0x33c   : > { %2614 = vmatprep.subr.mxu0 %v3402_v1 }
 0x33e   : > { %2607 = vmatmul.mubr.msk.f32.vlgmr.msra.gmra.mrb[8].mxu0 %vm854_vm2, %v1610_v37 }
 0x33f   : > { %2616 = vmatprep.mubr.msk.f32.mxu0 %vm3401_vm0, %v3402_v1 }
 0x397   : > { %v1111_v44 = vpop.f32.mrb[2].mxu1 }
 0x398   : > { %v1112_v45 = vadd.f32 %v2478_v42, %v1111_v44  ;;  %v2578_v46 = vpop.f32.mrb[3].mxu1 }
 0x39a   : > { %v1116_v47 = vsel %vm854_vm2, %v1112_v45, -inf }
 0x39b   : > { %1117 = vmax.xlane.f32.xlu0 %v1116_v47  ;;  %v1811_v47 = vld [vmem:[#allocation18] sm:$0xff] }
 0x409   : > { %v1298_v49 = vpop.f32.mrb[4].mxu0 }
 0x40a   : > { %v1299_v50 = vadd.f32 %v2478_v42, %v1298_v49  ;;  %v2588_v51 = vpop.f32.mrb[5].mxu0 }
 0x40c   : > { %v1304_v52 = vsel %vm854_vm2, %v1299_v50, -inf }
 0x40d   : > { %1305 = vmax.xlane.f32.xlu1 %v1304_v52  ;;  %v1491_v53 = vpop.f32.mrb[6].mxu0  ;;  %v1320_v52 = vld [vmem:[#allocation4 + $0x8] sm:$0xff] }
 0x40e   : > { %v1492_v54 = vadd.f32 %v2478_v42, %v1491_v53  ;;  %v2598_v55 = vpop.f32.mrb[7].mxu0 }
 0x410   : > { %v1497_v56 = vsel %vm854_vm2, %v1492_v54, -inf }
 0x411   : > { %1498 = vmax.xlane.f32.xlu0 %v1497_v56  ;;  %v1683_v57 = vpop.f32.mrb[8].mxu0  ;;  %v1513_v56 = vld [vmem:[#allocation4 + $0x10] sm:$0xff] }
 0x412   : > { %v1684_v58 = vadd.f32 %v2478_v42, %v1683_v57  ;;  %v2608_v59 = vpop.f32.mrb[9].mxu0  ;;  %v1131_v42 = vld [vmem:[#allocation4] sm:$0xff] }
 0x414   : > { %v1689_v60 = vsel %vm854_vm2, %v1684_v58, -inf }
 0x415   : > { %1690 = vmax.xlane.f32.xlu0 %v1689_v60 }
 0x428   : > { %v1118_v62 = vpop.xlane.xlu0 %1117 }
 0x429   : > { %v4050_v63 = vmax.f32 %v4047_v61, %v1118_v62 }
 0x42b   : > { %v1120_v0 = vsub.f32 %v4047_v61, %v4050_v63  ;;  %1221 = vst.msk [vmem:[#allocation3] sm:$0xff] %vm845_vm3, %v4050_v63  ;;  %1125 = vperm.xlu1 %2840, %v4050_v63   ;;  %v1705_v61 = vld [vmem:[#allocation4 + $0x18] sm:$0xff] }
 0x49a   : > { %v1306_v3 = vpop.xlane.xlu1 %1305 }
 0x49b   : > { %v1307_v4 = vmax.f32 %v1303_v2, %v1306_v3 }
 0x49d   : > { %1414 = vst.msk [vmem:[#allocation3 + $0x8] sm:$0xff] %vm845_vm3, %v1307_v4  ;;  %1313 = vperm.xlu0 %2841, %v1307_v4   ;;  %v1308_v19 = vsub.f32 %v1303_v2, %v1307_v4  ;;  %v1139_v4 = vld [vmem:[#allocation5] sm:$0xff] }
 0x49e   : > { %v1499_v6 = vpop.xlane.xlu0 %1498 }
 0x49f   : > { %v4061_v7 = vmax.f32 %v4057_v5, %v1499_v6  ;;  %v1309_v20 = vmul.f32 1.442695, %v1308_v19 }
 0x4a1   : > { %v1501_v9 = vsub.f32 %v4057_v5, %v4061_v7  ;;  %1606 = vst.msk [vmem:[#allocation3 + $0x10] sm:$0xff] %vm845_vm3, %v4061_v7  ;;  %1506 = vperm.xlu1 %2840, %v4061_v7  }
 0x4a2   : > { %v1691_v10 = vpop.xlane.xlu0 %1690 }
 0x4a3   : > { %v4071_v11 = vmax.f32 %v4063_v8, %v1691_v10 }
 0x4a5   : > { %v1693_v12 = vsub.f32 %v4063_v8, %v4071_v11  ;;  %1798 = vst.msk [vmem:[#allocation3 + $0x18] sm:$0xff] %vm845_vm3, %v4071_v11  ;;  %1698 = vperm.xlu1 %2840, %v4071_v11   ;;  %v1821_v11 = vld [vmem:[#allocation18 + $0x8] sm:$0xff] }
 0x4a6   : > { %2615 = vmatpush3.msra.mxu0 %v1821_v11 }
 0x4a7   : > { %v1694_v51 = vmul.f32 1.442695, %v1693_v12  ;;  %2624 = vmatprep.subr.mxu0 %v3402_v1 }
 0x4a9   : > { %1336 = vrot.lane.b32.xlu1 %v4025_v40, %s3404_s28 }
 0x4aa   : > { %v1126_v13 = vpop.permute.xlu1 %1125 }
 0x4ab   : > { %v1128_v15 = vsub.f32 %v1112_v45, %v1126_v13 }
 0x4ad   : > { %v1129_v16 = vmul.f32 1.442695, %v1128_v15  ;;  %1528 = vrot.lane.b32.xlu1 %v4025_v40, %s3403_s19 }
 0x4af   : > { %2842 = vpow2.f32 %v1129_v16 }
 0x4b0   : > { %2844 = vpow2.f32 %v1309_v20 }
 0x4b1   : > { %1720 = vrot.lane.b32.xlu1 %v4025_v40, %s3405_s6  ;;  %v1121_v40 = vmul.f32 1.442695, %v1120_v0 }
 0x4b9   : > { %v2843_v17 = vpop.eup %2842 }
 0x4ba   : > { %2582 = vmatmul.mubr.msk.f32.vlgmr.msra.gmra.mrb[4].mxu1 %vm854_vm2, %v2843_v17  ;;  %v1133_v18 = vsel %vm854_vm2, %v2843_v17, 0.0  ;;  %v2845_v21 = vpop.eup %2844  ;;  %v2061_v17 = vld [vmem:[#allocation18 + $0x18] sm:$0xff] }
 0x4bb   : > { %2591 = vmatprep.mubr.msk.f32.mxu1 %vm3401_vm0, %v3402_v1  ;;  %v1321_v53 = vmul.f32 %v2845_v21, %v1320_v52 }
 0x4bc   : > { %1134 = vadd.xlane.f32.xlu0 %v1133_v18  ;;  %v1328_v18 = vld [vmem:[#allocation5 + $0x8] sm:$0xff] }
 0x4d2   : > { %1331 = vperm.xlu0 %2841, %v2845_v21  }
 0x51c   : > { %v1314_v22 = vpop.permute.xlu0 %1313 }
 0x51d   : > { %v1316_v23 = vsub.f32 %v1299_v50, %v1314_v22  ;;  %v1502_v50 = vmul.f32 1.442695, %v1501_v9 }
 0x51f   : > { %v1317_v24 = vmul.f32 1.442695, %v1316_v23 }
 0x520   : > { %v1507_v25 = vpop.permute.xlu1 %1506 }
 0x521   : > { %2846 = vpow2.f32 %v1317_v24  ;;  %v1509_v26 = vsub.f32 %v1492_v54, %v1507_v25 }
 0x523   : > { %v1510_v27 = vmul.f32 1.442695, %v1509_v26 }
 0x524   : > { %v1699_v28 = vpop.permute.xlu1 %1698 }
 0x525   : > { %2848 = vpow2.f32 %v1510_v27  ;;  %v1701_v29 = vsub.f32 %v1684_v58, %v1699_v28  ;;  %v1521_v28 = vld [vmem:[#allocation5 + $0x10] sm:$0xff] }
 0x527   : > { %v1702_v30 = vmul.f32 1.442695, %v1701_v29 }
 0x528   : > { %v1337_v31 = vpop.permute.xlu1 %1336 }
 0x529   : > { %2850 = vpow2.f32 %v1702_v30  ;;  %2590 = vmatpush3.msra.mxu1 %v1337_v31 }
 0x52a   : > { %2599 = vmatprep.subr.mxu1 %v3402_v1  ;;  %2852 = vpow2.f32 %v1121_v40 }
 0x52b   : > { %v2847_v32 = vpop.eup %2846  ;;  %2854 = vpow2.f32 %v1502_v50 }
 0x52c   : > { %v1529_v33 = vpop.permute.xlu1 %1528  ;;  %2592 = vmatmul.mubr.msk.f32.vlgmr.msra.gmra.mrb[6].mxu1 %vm854_vm2, %v2847_v32  ;;  %v1322_v34 = vsel %vm854_vm2, %v2847_v32, 0.0  ;;  %2856 = vpow2.f32 %v1694_v51  ;;  %v1713_v32 = vld [vmem:[#allocation5 + $0x18] sm:$0xff] }
 0x52d   : > { %2600 = vmatpush3.msra.mxu1 %v1529_v33  ;;  %1323 = vadd.xlane.f32.xlu1 %v1322_v34 }
 0x52e   : > { %2601 = vmatprep.mubr.msk.f32.mxu1 %vm3401_vm0, %v3402_v1  ;;  %2609 = vmatprep.subr.mxu1 %v3402_v1 }
 0x52f   : > { %v2849_v35 = vpop.eup %2848 }
 0x530   : > { %v1721_v36 = vpop.permute.xlu1 %1720  ;;  %2602 = vmatmul.mubr.msk.f32.vlgmr.msra.gmra.mrb[8].mxu1 %vm854_vm2, %v2849_v35  ;;  %v1515_v37 = vsel %vm854_vm2, %v2849_v35, 0.0 }
 0x531   : > { %2610 = vmatpush3.msra.mxu1 %v1721_v36  ;;  %1516 = vadd.xlane.f32.xlu1 %v1515_v37 }
 0x532   : > { %2611 = vmatprep.mubr.msk.f32.mxu1 %vm3401_vm0, %v3402_v1  ;;  %2619 = vmatprep.subr.mxu1 %v3402_v1 }
 0x533   : > { %v2851_v38 = vpop.eup %2850 }
 0x534   : > { %2612 = vmatmul.mubr.msk.f32.vlgmr.msra.gmra.mrb[10].mxu1 %vm854_vm2, %v2851_v38  ;;  %v1707_v39 = vsel %vm854_vm2, %v2851_v38, 0.0  ;;  %v2853_v41 = vpop.eup %2852 }
 0x535   : > { %1708 = vadd.xlane.f32.xlu1 %v1707_v39  ;;  %2621 = vmatprep.mubr.msk.f32.mxu1 %vm3401_vm0, %v3402_v1  ;;  %v1132_v43 = vmul.f32 %v2853_v41, %v1131_v42  ;;  %v2855_v54 = vpop.eup %2854 }
 0x536   : > { %2620 = vmatpush3.msra.mxu1 %v1811_v47  ;;  %v1514_v58 = vmul.f32 %v2855_v54, %v1513_v56  ;;  %v2857_v59 = vpop.eup %2856 }
 0x537   : > { %2629 = vmatprep.subr.mxu1 %v3402_v1  ;;  %v1706_v63 = vmul.f32 %v2857_v59, %v1705_v61 }
 0x546   : > { %1142 = vperm.xlu1 %2840, %v2853_v41   ;;  %v1977_v41 = vld [vmem:[#allocation18 + $0x10] sm:$0xff] }
 0x549   : > { %v1135_v44 = vpop.xlane.xlu0 %1134 }
 0x54a   : > { %v1136_v45 = vadd.f32 %v1135_v44, %v1132_v43 }
 0x54c   : > { %1138 = vst.msk [vmem:[#allocation4] sm:$0xff] %vm845_vm3, %v1136_v45 }
 0x551   : > { %v1332_v10 = vpop.permute.xlu0 %1331 }
 0x552   : > { %v1334_v19 = vmul.f32 %v1332_v10, %v1328_v18 }
 0x553   : > { %v1803_v46 = vld [vmem:[#allocation4] sm:$0xff] }
 0x554   : > { %1806 = vperm.xlu0 %2841, %v1803_v46  }
 0x58d   : > { %v1215_v48 = vpop.f32.mrb[4].mxu1 }
 0x58e   : > { %v2583_v49 = vpop.f32.mrb[5].mxu1 }
 0x5ba   : > { %v1324_v55 = vpop.xlane.xlu1 %1323 }
 0x5bb   : > { %v1325_v57 = vadd.f32 %v1324_v55, %v1321_v53 }
 0x5bd   : > { %1326 = vst.msk [vmem:[#allocation4 + $0x8] sm:$0xff] %vm845_vm3, %v1325_v57  ;;  %v2495_v57 = vld [vmem:[#allocation24] ss:$0 sm:$0xff] }
 0x5be   : > { %v1517_v60 = vpop.xlane.xlu1 %1516 }
 0x5bf   : > { %v1518_v62 = vadd.f32 %v1517_v60, %v1514_v58 }
 0x5c1   : > { %1519 = vst.msk [vmem:[#allocation4 + $0x10] sm:$0xff] %vm845_vm3, %v1518_v62 }
 0x5c2   : > { %v1709_v0 = vpop.xlane.xlu1 %1708 }
 0x5c3   : > { %v1710_v2 = vadd.f32 %v1709_v0, %v1706_v63 }
 0x5c4   : > { %v1813_v3 = vld [vmem:[#allocation4 + $0x8] sm:$0xff] }
 0x5c5   : > { %1711 = vst.msk [vmem:[#allocation4 + $0x18] sm:$0xff] %vm845_vm3, %v1710_v2  ;;  %1816 = vperm.xlu1 %2840, %v1813_v3  }
 0x5c6   : > { %v1143_v5 = vpop.permute.xlu1 %1142 }
 0x5c7   : > { %v1145_v6 = vmul.f32 %v1143_v5, %v1139_v4 }
 0x5c8   : > { %v1969_v7 = vld [vmem:[#allocation4 + $0x10] sm:$0xff] }
 0x5c9   : > { %v1219_v8 = vadd.f32 %v1215_v48, %v1145_v6  ;;  %1524 = vperm.xlu1 %2840, %v2855_v54   ;;  %1972 = vperm.xlu0 %2841, %v1969_v7  }
 0x5cb   : > { %1220 = vst.msk [vmem:[#allocation5] sm:$0xff] %vm854_vm2, %v1219_v8 }
 0x5cc   : > { %v2053_v9 = vld [vmem:[#allocation4 + $0x18] sm:$0xff] }
 0x5cd   : > { %1716 = vperm.xlu1 %2840, %v2857_v59   ;;  %2056 = vperm.xlu0 %2841, %v2053_v9   ;;  %v2497_v9 = vld [vmem:[#allocation27] ss:$0 sm:$0xff] }
 0x5d2   : > { %v1802_v15 = vld [vmem:[#allocation5] sm:$0xff] }
 0x5d3   : > { %v1807_v12 = vpop.permute.xlu0 %1806 }
 0x5d4   : > { %2858 = vrcp.f32 %v1807_v12 }
 0x5de   : > { %v2859_v13 = vpop.eup %2858 }
 0x5df   : > { %v1810_v16 = vmul.f32 %v2859_v13, %v1802_v15 }
 0x5e1   : > { %2622 = vmatmul.mubr.msk.f32.vlgmr.msra.gmra.mrb[12].mxu1 %vm854_vm2, %v1810_v16 }
 0x5e2   : > { %2630 = vmatpush3.msra.mxu1 %v2061_v17  ;;  %2631 = vmatprep.mubr.msk.f32.mxu1 %vm3401_vm0, %v3402_v1 }
 0x5ff   : > { %v1408_v20 = vpop.f32.mrb[6].mxu1 }
 0x600   : > { %v1412_v21 = vadd.f32 %v1408_v20, %v1334_v19  ;;  %v2593_v22 = vpop.f32.mrb[7].mxu1 }
 0x602   : > { %1413 = vst.msk [vmem:[#allocation5 + $0x8] sm:$0xff] %vm854_vm2, %v1412_v21 }
 0x603   : > { %v1600_v23 = vpop.f32.mrb[8].mxu1 }
 0x604   : > { %v2603_v24 = vpop.f32.mrb[9].mxu1 }
 0x607   : > { %v1792_v25 = vpop.f32.mrb[10].mxu1 }
 0x608   : > { %v2613_v26 = vpop.f32.mrb[11].mxu1 }
 0x609   : > { %v1812_v38 = vld [vmem:[#allocation5 + $0x8] sm:$0xff] }
 0x644   : > { %v1817_v27 = vpop.permute.xlu1 %1816 }
 0x645   : > { %2860 = vrcp.f32 %v1817_v27 }
 0x648   : > { %v1525_v29 = vpop.permute.xlu1 %1524  ;;  %v1973_v30 = vpop.permute.xlu0 %1972 }
 0x649   : > { %v1527_v31 = vmul.f32 %v1525_v29, %v1521_v28  ;;  %2862 = vrcp.f32 %v1973_v30 }
 0x64b   : > { %v1604_v33 = vadd.f32 %v1600_v23, %v1527_v31 }
 0x64c   : > { %v1717_v34 = vpop.permute.xlu1 %1716  ;;  %v2057_v35 = vpop.permute.xlu0 %2056 }
 0x64d   : > { %1605 = vst.msk [vmem:[#allocation5 + $0x10] sm:$0xff] %vm854_vm2, %v1604_v33  ;;  %v1719_v36 = vmul.f32 %v1717_v34, %v1713_v32  ;;  %2864 = vrcp.f32 %v2057_v35 }
 0x64f   : > { %v2861_v37 = vpop.eup %2860  ;;  %v1796_v39 = vadd.f32 %v1792_v25, %v1719_v36 }
 0x650   : > { %v1820_v40 = vmul.f32 %v2861_v37, %v1812_v38 }
 0x651   : > { %1797 = vst.msk [vmem:[#allocation5 + $0x18] sm:$0xff] %vm854_vm2, %v1796_v39 }
 0x652   : > { %2617 = vmatmul.mubr.msk.f32.vlgmr.msra.gmra.mrb[10].mxu0 %vm854_vm2, %v1820_v40 }
 0x653   : > { %v2863_v42 = vpop.eup %2862  ;;  %2625 = vmatpush3.msra.mxu0 %v1977_v41  ;;  %2626 = vmatprep.mubr.msk.f32.mxu0 %vm3401_vm0, %v3402_v1 }
 0x654   : > { %v1968_v43 = vld [vmem:[#allocation5 + $0x10] sm:$0xff] }
 0x655   : > { %v1976_v44 = vmul.f32 %v2863_v42, %v1968_v43 }
 0x657   : > { %v2865_v45 = vpop.eup %2864  ;;  %2627 = vmatmul.mubr.msk.f32.vlgmr.msra.gmra.mrb[12].mxu0 %vm854_vm2, %v1976_v44 }
 0x658   : > { %v2052_v46 = vld [vmem:[#allocation5 + $0x18] sm:$0xff] }
 0x659   : > { %v2060_v47 = vmul.f32 %v2865_v45, %v2052_v46 }
 0x65b   : > { %2632 = vmatmul.mubr.msk.f32.vlgmr.msra.gmra.mrb[14].mxu1 %vm854_vm2, %v2060_v47 }
 0x6b4   : > { %v1964_v48 = vpop.f32.mrb[12].mxu1 }
 0x6b5   : > { %v2623_v49 = vpop.f32.mrb[13].mxu1 }
 0x725   : > { %v1891_v50 = vpop.f32.mrb[10].mxu0 }
 0x726   : > { %v1965_v51 = vadd.f32 %v1964_v48, %v1891_v50  ;;  %v2618_v52 = vpop.f32.mrb[11].mxu0 }
 0x72a   : > { %v2047_v53 = vpop.f32.mrb[12].mxu0 }
 0x72b   : > { %v2051_v54 = vadd.f32 %v2047_v53, %v1965_v51  ;;  %v2628_v55 = vpop.f32.mrb[13].mxu0 }
 0x72e   : > { %v2131_v56 = vpop.f32.mrb[14].mxu1 }
 0x72f   : > { %v2135_v1 = vadd.f32 %v2131_v56, %v2051_v54  ;;  %v2633_v58 = vpop.f32.mrb[15].mxu1 }
 0x731   : > { %v2143_v59 = vadd.f32 %v2495_v57, %v2135_v1 }
 0x733   : > { %v2145_v60 = vadd.f32 %v2143_v59, %v3972_v14  ;;  %v2496_v14 = vld [vmem:[#allocation26] ss:$0 sm:$0xff] }
 0x735   : > { %v2146_v61 = vsel %vm770_vm1, %v2145_v60, 0.0 }
 0x736   : > { %2147 = vadd.xlane.f32.xlu1 %v2146_v61 }
 0x7c3   : > { %v2148_v62 = vpop.xlane.xlu1 %2147 }
 0x7c4   : > { %v2150_v63 = vmul.f32 0.03125, %v2148_v62 }
 0x7c6   : > { %v2151_v0 = vsub.f32 %v2145_v60, %v2150_v63 }
 0x7c8   : > { %v2152_v2 = vmul.f32 %v2151_v0, %v2151_v0 }
 0x7ca   : > { %v2153_v3 = vsel %vm770_vm1, %v2152_v2, 0.0 }
 0x7cb   : > { %2154 = vadd.xlane.f32.xlu0 %v2153_v3 }
 0x858   : > { %v2155_v4 = vpop.xlane.xlu0 %2154 }
 0x859   : > { %v2156_v5 = vmul.f32 0.03125, %v2155_v4 }
 0x85b   : > { %v2157_v6 = vadd.f32 1e-05, %v2156_v5 }
 0x85d   : > { %2866 = vrsqrt.f32 %v2157_v6 }
 0x867   : > { %v2867_v7 = vpop.eup %2866 }
 0x868   : > { %v2159_v8 = vmul.f32 %v2867_v7, %v2151_v0 }
 0x86a   : > { %v2167_v10 = vmul.f32 %v2496_v14, %v2159_v8 }
 0x86c   : > { %v2175_v11 = vadd.f32 %v2497_v9, %v2167_v10 }
 0x86e   : > { %2176 = vst.msk [vmem:[%s753_s25] sm:$0xff] %vm770_vm1, %v2175_v11 }
 0x86f   : > { %3281 = shalt.err (!%p3278_p3)
}
 0x870   : > { %s3282_s9 = scalar_lea.hbm %s4138_s24, 128  ;;  %s3286_s19 = scalar_lea.hbm %s4295_s20, 256 }
 0x871   : > { %p3283_p1 = scmp.ne.s32.totalorder %s4138_s24, %s3282_s9  ;;  %p3287_p0 = scmp.lt.u32.totalorder %s4138_s24, %s4295_s20 }
 0x872   : > { %p3288_p4 = scmp.lt.u32.totalorder %s3286_s19, %s3282_s9  ;;  %p3290_p11 = scmp.lt.u32.totalorder %s3282_s9, %s4138_s24 }
 0x873   : > { %p3284_p9 = pnand %p3283_p1, %p4296_p12 }
 0x874   : > { %p3289_p13 = por %p3288_p4, %p3287_p0 }
 0x875   : > { %p3285_p6 = pneg %p3284_p9 }
 0x876   : > { %p3291_p10 = por %p3290_p11, %p3289_p13 }
 0x878   : > { %p3292_p7 = pnand %p3291_p10, %p3285_p6 }
 0x87a   : > { %3295 = shalt.err (!%p3292_p7)
}
 0x87b   : > { %2700 = dma.vmem_to_hbm [thread:$0]  (%p4296_p12), %s4140_s26, 128, %s4138_s24, %s2178_s2  }
 0x87c PF: > { %s4297_s22 = sld [smem:[#allocation45_spill]]  ;;  %s2204_s7 = sand.u32 1, %s3362_s29  }
 0x87d   : > { %p4299_p2 = scmp.ge.s32.totalorder %s3382_s18, 2  ;;  %s2205_s25 = scalar_lea.sflag [#allocation8], %s2204_s7 }
 0x882   : > { %p4298_p8 = scmp.ne.s32.totalorder %s4297_s22, 0 }
 0x884   : > { %p2747_p5 = pnand %p4299_p2, %p4298_p8 }
 0x886   : > { %3357 = dma.done.wait (!%p2747_p5), %s2205_s25, 128  }
 0x887   : > { %3359 = vsyncadd (!%p2747_p5), %s2205_s25, 4294967168  ;;  %s41_s18 = sadd.s32 1, %s3382_s18   ;;  %s4300_s3 = sld [smem:[#allocation40_spill]] }
 0x888   : > { %p38_p3 = scmp.ge.s32.totalorder %s41_s18, 4   ;;  %s4301_s15 = sld [smem:[#allocation44_spill]] }
 0x889   : > { %s4302_s14 = sld [smem:[#allocation43_spill]]  ;;  %s4303_s29 = smov %s3366_s30 }
 0x88a   : > { %s4305_s16 = smov %s3378_s17  ;;  %40 = sbr.rel (!%p38_p3) target bundleno = 29 (0x1d), region = 215 }
 0x88d   : > { %s4304_s30 = smov %s4300_s3 }
 0x88f   : > { %s4306_s17 = smov %s4302_s14 }
 0x891   :  { %2210 = vsyncpa [#allocation7], 1 }
 0x892   :  { %2212 = vsyncpa [#allocation7 + $0x1], 1 }
 0x893   :  { %2213 = vsyncpa [#allocation10], 1 }
 0x894   :  { %2215 = vsyncpa [#allocation10 + $0x1], 1 }
 0x895   :  { %2216 = vsyncpa [#allocation13], 1 }
 0x896   :  { %2218 = vsyncpa [#allocation13 + $0x1], 1 }
 0x897   :  { %2219 = vsyncpa [#allocation16], 1 }
 0x898   :  { %2220 = vsyncpa [#allocation19], 1 }
 0x899   :  { %2221 = vsyncpa [#allocation22], 1 }
 0x89a   :  { %2222 = vsyncpa [#allocation25], 1 }
 0x89b   :  { %2223 = vsyncpa [#allocation28], 1 }
 0x89c   :  { %2224 = vsyncpa [#allocation8], 1 }
 0x89d   :  { %2226 = vsyncpa [#allocation8 + $0x1], 1 }

</bundles_post_ra>
